<compile_context>
chip_gen: v7x
topology: tpu7x:2x2x1
jax: 0.10.0
libtpu: 0.0.40
codegen_flags: <defaults>
</compile_context>

<pallas_src>
import math
import functools

import jax
import jax.numpy as jnp
from jax.experimental import pallas as pl
from jax.experimental.pallas import tpu as pltpu

# ---------------- configuration (small, consistent with the module) ----------------
SEQ = 8          # L
BATCH = 2        # N
EMBED = 64       # embed_dim (module default 1936; scaled down, still divisible by nhead)
NHEAD = 4
HEAD_DIM = EMBED // NHEAD
FFN = 128        # dim_feedforward
LN_EPS = 1e-5
NEG_INF = -1e9


def _decoder_layer_kernel(xpe_ref, mask_ref,
                          wqkv_ref, w1o_ref, w2_ref, ball_ref,
                          out_ref, *maybe_attnw_ref):
    L, N, E, H, HD = SEQ, BATCH, EMBED, NHEAD, HEAD_DIM
    LN = L * N

    xpe = xpe_ref[...]                          # (L*N, 2E): [x | pe] per token row (l, n)
    x2d = xpe[:, :E]                            # residual-branch input (L*N, E)

    # --- fused Q|K|V in-projection: one MXU dot, K = 2E = 128 ---
    qkv = jnp.dot(xpe, wqkv_ref[...],
                  preferred_element_type=jnp.float32) + ball_ref[0:1, :]   # (LN, 3E)
    q = qkv[:, :E]              # scale already folded into Wq / bq
    k = qkv[:, E:2 * E]
    v = qkv[:, 2 * E:]

    # (L*N, E) -> (N*H, L, HD): heads become a single leading batch dim
    # (Mosaic-supported batched-matmul form); each relayout moves <= 4 KB.
    def to_heads(t):
        t = t.reshape(L, N, H, HD)
        return jnp.transpose(t, (1, 2, 0, 3)).reshape(N * H, L, HD)

    qh, kh, vh = to_heads(q), to_heads(k), to_heads(v)

    s = jnp.einsum('bqd,bkd->bqk', qh, kh,
                   preferred_element_type=jnp.float32)           # (N*H, L, L)
    s = s + mask_ref[...]                                        # (N*H, 1, L) additive bias
    s = s - jnp.max(s, axis=-1, keepdims=True)
    e = jnp.exp(s)
    # approx=True -> EUP vrcp slot (otherwise idle); ~1e-4-level precision trade.
    p = e * pl.reciprocal(jnp.sum(e, axis=-1, keepdims=True), approx=True)

    if maybe_attnw_ref:  # static Python flag: only when attention weights requested
        # averaged over heads (PyTorch default average_attn_weights=True)
        maybe_attnw_ref[0][...] = jnp.mean(p.reshape(N, H, L, L), axis=1)   # (N, L, L)

    ctx = jnp.einsum('bqk,bkd->bqd', p, vh,
                     preferred_element_type=jnp.float32)         # (N*H, L, HD)
    ctx = jnp.transpose(ctx.reshape(N, H, L, HD), (2, 0, 1, 3)).reshape(LN, E)

    # --- static views into the packed parameter slabs ---
    w1 = w1o_ref[:, :FFN]           # (E, FFN)
    wo = w1o_ref[:, FFN:]           # (E, E)
    b1 = ball_ref[1:2, :FFN]
    bo = ball_ref[1:2, FFN:]
    g = ball_ref[2:3, :E]
    beta = ball_ref[2:3, E:2 * E]
    b2 = ball_ref[2:3, 2 * E:]

    attn_out = jnp.dot(ctx, wo, preferred_element_type=jnp.float32) + bo

    # residual + LayerNorm (norm3)
    tgt = x2d + attn_out
    mean = jnp.mean(tgt, axis=-1, keepdims=True)
    c = tgt - mean
    var = jnp.mean(c * c, axis=-1, keepdims=True)
    tgt_n = c * jax.lax.rsqrt(var + LN_EPS) * g + beta

    # feed-forward: linear2(relu(linear1(tgt_n))) + residual
    h1 = jnp.maximum(jnp.dot(tgt_n, w1, preferred_element_type=jnp.float32) + b1, 0.0)
    ff = jnp.dot(h1, w2_ref[...], preferred_element_type=jnp.float32) + b2

    # Lane-dense (L, N*E) = (8, 128) output.  We avoid a minor-dim reshape
    # (16,64)->(8,128) (riskier lowering) and instead regroup with a
    # lane-preserving reshape + leading-dim transpose, then fill the two
    # 64-lane halves of the output tile.
    y = jnp.transpose((tgt_n + ff).reshape(L, N, E), (1, 0, 2))   # (N, L, E)
    for n in range(N):
        out_ref[:, n * E:(n + 1) * E] = y[n]


def pack_params(params):
    """One-time (outside jit) packing of parameters into lane-dense slabs."""
    # bias-slab row widths assume dim_feedforward == 2*embed_dim (pad b1 otherwise)
    assert FFN == 2 * EMBED, "bias-slab packing assumes dim_feedforward == 2*embed_dim"
    scale = 1.0 / math.sqrt(HEAD_DIM)
    wq_s = params["wq"] * scale
    zeros = jnp.zeros((EMBED, EMBED), jnp.float32)
    # [[Wq*s, Wk, Wv], [Wq*s, Wk, 0]]  ->  [x | pe] @ W = [(x+pe)Wq*s, (x+pe)Wk, xWv]
    w_qkv = jnp.concatenate([
        jnp.concatenate([wq_s, params["wk"], params["wv"]], axis=1),
        jnp.concatenate([wq_s, params["wk"], zeros], axis=1),
    ], axis=0)                                                          # (2E, 3E)
    w_1o = jnp.concatenate([params["w1"], params["wo"]], axis=1)        # (E, FFN+E)
    b_all = jnp.concatenate([
        jnp.concatenate([params["bq"] * scale, params["bk"], params["bv"]], axis=1),
        jnp.concatenate([params["b1"], params["bo"]], axis=1),
        jnp.concatenate([params["ln_g"], params["ln_b"], params["b2"]], axis=1),
    ], axis=0)                                                          # (3, 3E)
    return {"w_qkv": w_qkv, "w_1o": w_1o, "w_2": params["w2"], "b_all": b_all}


@functools.partial(jax.jit, static_argnames=("return_attn_weights",))
def transformer_decoder_layer(global_input, key_padding_mask, position_embed,
                              packed, return_attn_weights=True):
    """global_input, position_embed: (L, N, E); key_padding_mask: (N, L) bool.
    Returns (tgt (L, N, E), attn_weights (N, L, L)) [weights only if requested]."""
    L, N, E = global_input.shape
    H = NHEAD

    # lane-dense activation slab [x | pe]: free reshapes + one tiny concat
    x2d = global_input.astype(jnp.float32).reshape(L * N, E)
    pe2d = position_embed.astype(jnp.float32).reshape(L * N, E)
    xpe = jnp.concatenate([x2d, pe2d], axis=-1)                        # (L*N, 2E)

    # additive key-padding bias, pre-broadcast over heads: (N*H, 1, L)
    bias = jnp.where(key_padding_mask, NEG_INF, 0.0).astype(jnp.float32)
    mask_nh = jnp.repeat(bias, H, axis=0)[:, None, :]

    full = lambda *shape: pl.BlockSpec(shape, lambda i: (0,) * len(shape))

    out_shapes = [jax.ShapeDtypeStruct((L, N * E), jnp.float32)]       # lane-dense (8,128)
    out_specs = [full(L, N * E)]
    if return_attn_weights:
        out_shapes.append(jax.ShapeDtypeStruct((N, L, L), jnp.float32))
        out_specs.append(full(N, L, L))

    results = pl.pallas_call(
        _decoder_layer_kernel,
        out_shape=tuple(out_shapes),
        grid=(1,),                            # single fused program (whole batch)
        in_specs=[
            full(L * N, 2 * E),               # [x | pe]       (16, 128)
            full(N * H, 1, L),                # key-padding bias per (batch, head)
            full(2 * E, 3 * E),               # [[Wq*s, Wk, Wv], [Wq*s, Wk, 0]]
            full(E, FFN + E),                 # [W1 | Wo]
            full(FFN, E),                     # W2
            full(3, 3 * E),                   # bias / LayerNorm slab
        ],
        out_specs=tuple(out_specs),
        compiler_params=pltpu.CompilerParams(
            dimension_semantics=("arbitrary",)),
        # ~130 KB of operands: no vmem_limit_bytes / K-tiling needed on any
        # generation.  The real module (E=1936, FFN=2048) would need a K-tiled
        # grid + accumulator scratch to fit v7x's 64 MiB VMEM.
    )(xpe, mask_nh, packed["w_qkv"], packed["w_1o"], packed["w_2"], packed["b_all"])

    tgt = results[0].reshape(L, N, E)         # free metadata reshape
    if return_attn_weights:
        return tgt, results[1]
    return tgt


# ---------------- pure-JAX reference (for verification) ----------------
def reference(global_input, key_padding_mask, position_embed, params):
    x = jnp.transpose(global_input, (1, 0, 2))       # (N, L, E)
    pe = jnp.transpose(position_embed, (1, 0, 2))
    qk_in = x + pe
    q = qk_in @ params["wq"] + params["bq"]
    k = qk_in @ params["wk"] + params["bk"]
    v = x @ params["wv"] + params["bv"]
    N, L, E = x.shape
    qh = q.reshape(N, L, NHEAD, HEAD_DIM).transpose(0, 2, 1, 3)
    kh = k.reshape(N, L, NHEAD, HEAD_DIM).transpose(0, 2, 1, 3)
    vh = v.reshape(N, L, NHEAD, HEAD_DIM).transpose(0, 2, 1, 3)
    scores = jnp.einsum("nhqd,nhkd->nhqk", qh, kh) / math.sqrt(HEAD_DIM)
    bias = jnp.where(key_padding_mask, NEG_INF, 0.0)[:, None, None, :]
    scores = scores + bias
    p = jax.nn.softmax(scores, axis=-1)
    attn_avg = p.mean(axis=1)                         # (N, L, L)
    o = jnp.einsum("nhqk,nhkd->nhqd", p, vh).transpose(0, 2, 1, 3).reshape(N, L, E)
    attn_out = o @ params["wo"] + params["bo"]
    tgt = x + attn_out
    mean = tgt.mean(-1, keepdims=True)
    var = ((tgt - mean) ** 2).mean(-1, keepdims=True)
    tgt_n = (tgt - mean) * jax.lax.rsqrt(var + LN_EPS) * params["ln_g"] + params["ln_b"]
    ff = jnp.maximum(tgt_n @ params["w1"] + params["b1"], 0.0) @ params["w2"] + params["b2"]
    out = tgt_n + ff
    return jnp.transpose(out, (1, 0, 2)), attn_avg


def init_params(key):
    ks = jax.random.split(key, 12)
    s = 0.05
    return {
        "wq": jax.random.normal(ks[0], (EMBED, EMBED), jnp.float32) * s,
        "wk": jax.random.normal(ks[1], (EMBED, EMBED), jnp.float32) * s,
        "wv": jax.random.normal(ks[2], (EMBED, EMBED), jnp.float32) * s,
        "bq": jax.random.normal(ks[3], (1, EMBED), jnp.float32) * s,
        "bk": jax.random.normal(ks[4], (1, EMBED), jnp.float32) * s,
        "bv": jax.random.normal(ks[5], (1, EMBED), jnp.float32) * s,
        "wo": jax.random.normal(ks[6], (EMBED, EMBED), jnp.float32) * s,
        "bo": jax.random.normal(ks[7], (1, EMBED), jnp.float32) * s,
        "ln_g": jnp.ones((1, EMBED), jnp.float32),
        "ln_b": jnp.zeros((1, EMBED), jnp.float32),
        "w1": jax.random.normal(ks[8], (EMBED, FFN), jnp.float32) * s,
        "b1": jax.random.normal(ks[9], (1, FFN), jnp.float32) * s,
        "w2": jax.random.normal(ks[10], (FFN, EMBED), jnp.float32) * s,
        "b2": jax.random.normal(ks[11], (1, EMBED), jnp.float32) * s,
    }


if __name__ == "__main__":
    key = jax.random.PRNGKey(0)
    k_x, k_pe, k_p = jax.random.split(key, 3)

    global_input = jax.random.normal(k_x, (SEQ, BATCH, EMBED), jnp.float32)
    position_embed = jax.random.normal(k_pe, (SEQ, BATCH, EMBED), jnp.float32)
    # mask out the last 2 keys of batch element 1 (no fully-masked rows)
    key_padding_mask = jnp.zeros((BATCH, SEQ), jnp.bool_)
    key_padding_mask = key_padding_mask.at[1, SEQ - 2:].set(True)

    params = init_params(k_p)
    packed = pack_params(params)

    tgt, attn_w = transformer_decoder_layer(global_input, key_padding_mask,
                                            position_embed, packed)
    jax.block_until_ready((tgt, attn_w))

    tgt_ref, attn_ref = reference(global_input, key_padding_mask, position_embed, params)
    assert tgt.shape == (SEQ, BATCH, EMBED)
    assert attn_w.shape == (BATCH, SEQ, SEQ)
    # tolerances relaxed to 1e-3: approx (EUP) reciprocal in the softmax
    # normalization trades ~1e-4-level precision (per the performance review).
    assert jnp.allclose(tgt, tgt_ref, atol=1e-3, rtol=1e-3), \
        float(jnp.max(jnp.abs(tgt - tgt_ref)))
    assert jnp.allclose(attn_w, attn_ref, atol=1e-3, rtol=1e-3), \
        float(jnp.max(jnp.abs(attn_w - attn_ref)))

    print("KERNEL_OK")
</pallas_src>

<mosaic_0001>
module attributes {stable_mosaic.version = 11 : i64} {
  func.func @_decoder_layer_kernel(%arg0: i32, %arg1: memref<16x128xf32, #tpu.memory_space<vmem>>, %arg2: memref<8x1x8xf32, #tpu.memory_space<vmem>>, %arg3: memref<128x192xf32, #tpu.memory_space<vmem>>, %arg4: memref<64x192xf32, #tpu.memory_space<vmem>>, %arg5: memref<128x64xf32, #tpu.memory_space<vmem>>, %arg6: memref<3x192xf32, #tpu.memory_space<vmem>>, %arg7: memref<8x128xf32, #tpu.memory_space<vmem>>, %arg8: memref<2x8x8xf32, #tpu.memory_space<vmem>>) attributes {dimension_semantics = [#tpu.dimension_semantics<arbitrary>], iteration_bounds = array<i64: 1>, scalar_prefetch = 0 : i64, scratch_operands = 0 : i64, tpu.core_type = #tpu.core_type<tc>, window_params = [{pipeline_mode = #tpu.pipeline_mode<synchronous>, transform_indices = @transform_0, window_bounds = array<i64: 16, 128>}, {pipeline_mode = #tpu.pipeline_mode<synchronous>, transform_indices = @transform_1, window_bounds = array<i64: 8, 1, 8>}, {pipeline_mode = #tpu.pipeline_mode<synchronous>, transform_indices = @transform_2, window_bounds = array<i64: 128, 192>}, {pipeline_mode = #tpu.pipeline_mode<synchronous>, transform_indices = @transform_3, window_bounds = array<i64: 64, 192>}, {pipeline_mode = #tpu.pipeline_mode<synchronous>, transform_indices = @transform_4, window_bounds = array<i64: 128, 64>}, {pipeline_mode = #tpu.pipeline_mode<synchronous>, transform_indices = @transform_5, window_bounds = array<i64: 3, 192>}, {pipeline_mode = #tpu.pipeline_mode<synchronous>, transform_indices = @transform_6, window_bounds = array<i64: 8, 128>}, {pipeline_mode = #tpu.pipeline_mode<synchronous>, transform_indices = @transform_7, window_bounds = array<i64: 2, 8, 8>}]} {
    %c0 = arith.constant 0 : index
    %c0_0 = arith.constant 0 : index
    %0 = vector.load %arg1[%c0, %c0_0] : memref<16x128xf32, #tpu.memory_space<vmem>>, vector<16x128xf32>
    %1 = vector.extract_strided_slice %0 {offsets = [0, 0], sizes = [16, 64], strides = [1, 1]} : vector<16x128xf32> to vector<16x64xf32>
    %c0_1 = arith.constant 0 : index
    %c0_2 = arith.constant 0 : index
    %2 = vector.load %arg3[%c0_1, %c0_2] : memref<128x192xf32, #tpu.memory_space<vmem>>, vector<128x192xf32>
    %cst = arith.constant dense<0.000000e+00> : vector<16x192xf32>
    %3 = tpu.matmul %0, %2, %cst {dimension_numbers = #tpu.dot_dimension_numbers<[1], [0], [0], [1], [0, 0, 1, 1], [], []>} : vector<16x128xf32>, vector<128x192xf32>, vector<16x192xf32> -> vector<16x192xf32>
    %c0_3 = arith.constant 0 : index
    %c0_4 = arith.constant 0 : index
    %4 = vector.load %arg6[%c0_3, %c0_4] : memref<3x192xf32, #tpu.memory_space<vmem>>, vector<1x192xf32>
    %5 = vector.broadcast %4 : vector<1x192xf32> to vector<16x192xf32>
    %6 = arith.addf %3, %5 : vector<16x192xf32>
    %7 = vector.extract_strided_slice %6 {offsets = [0, 0], sizes = [16, 64], strides = [1, 1]} : vector<16x192xf32> to vector<16x64xf32>
    %8 = vector.extract_strided_slice %6 {offsets = [0, 64], sizes = [16, 64], strides = [1, 1]} : vector<16x192xf32> to vector<16x64xf32>
    %9 = vector.extract_strided_slice %6 {offsets = [0, 128], sizes = [16, 64], strides = [1, 1]} : vector<16x192xf32> to vector<16x64xf32>
    %10 = vector.shape_cast %7 : vector<16x64xf32> to vector<8x2x4x16xf32>
    %11 = tpu.transpose %10, [1, 2, 0, 3] : vector<8x2x4x16xf32> -> vector<2x4x8x16xf32>
    %12 = vector.shape_cast %11 : vector<2x4x8x16xf32> to vector<8x8x16xf32>
    %13 = vector.shape_cast %8 : vector<16x64xf32> to vector<8x2x4x16xf32>
    %14 = tpu.transpose %13, [1, 2, 0, 3] : vector<8x2x4x16xf32> -> vector<2x4x8x16xf32>
    %15 = vector.shape_cast %14 : vector<2x4x8x16xf32> to vector<8x8x16xf32>
    %16 = vector.shape_cast %9 : vector<16x64xf32> to vector<8x2x4x16xf32>
    %17 = tpu.transpose %16, [1, 2, 0, 3] : vector<8x2x4x16xf32> -> vector<2x4x8x16xf32>
    %18 = vector.shape_cast %17 : vector<2x4x8x16xf32> to vector<8x8x16xf32>
    "tpu.trace_start"() <{level = 10 : i32, message = "bqd,bkd->bqk"}> : () -> ()
    %cst_5 = arith.constant dense<0.000000e+00> : vector<8x8x8xf32>
    %19 = tpu.matmul %12, %15, %cst_5 {dimension_numbers = #tpu.dot_dimension_numbers<[2], [2], [1], [1], [0, 0, 0, 1, 1, 1], [0], [0]>} : vector<8x8x16xf32>, vector<8x8x16xf32>, vector<8x8x8xf32> -> vector<8x8x8xf32>
    "tpu.trace_stop"() : () -> ()
    %c0_6 = arith.constant 0 : index
    %c0_7 = arith.constant 0 : index
    %c0_8 = arith.constant 0 : index
    %20 = vector.load %arg2[%c0_6, %c0_7, %c0_8] : memref<8x1x8xf32, #tpu.memory_space<vmem>>, vector<8x1x8xf32>
    %21 = vector.broadcast %20 : vector<8x1x8xf32> to vector<8x8x8xf32>
    %22 = arith.addf %19, %21 : vector<8x8x8xf32>
    %cst_9 = arith.constant dense<0xFF800000> : vector<8x8xf32>
    %23 = vector.multi_reduction <maximumf>, %22, %cst_9 [2] : vector<8x8x8xf32> to vector<8x8xf32>
    %24 = vector.shape_cast %23 : vector<8x8xf32> to vector<8x8x1xf32>
    %25 = vector.broadcast %24 : vector<8x8x1xf32> to vector<8x8x8xf32>
    %26 = arith.subf %22, %25 : vector<8x8x8xf32>
    %27 = math.exp %26 : vector<8x8x8xf32>
    %cst_10 = arith.constant dense<0.000000e+00> : vector<8x8xf32>
    %28 = vector.multi_reduction <add>, %27, %cst_10 [2] : vector<8x8x8xf32> to vector<8x8xf32>
    %29 = vector.shape_cast %28 : vector<8x8xf32> to vector<8x8x1xf32>
    %30 = tpu.reciprocal %29 {approx = true} : vector<8x8x1xf32> -> vector<8x8x1xf32>
    %31 = vector.broadcast %30 : vector<8x8x1xf32> to vector<8x8x8xf32>
    %32 = arith.mulf %27, %31 : vector<8x8x8xf32>
    %33 = vector.shape_cast %32 : vector<8x8x8xf32> to vector<2x4x8x8xf32>
    %cst_11 = arith.constant dense<0.000000e+00> : vector<2x8x8xf32>
    %34 = vector.multi_reduction <add>, %33, %cst_11 [1] : vector<2x4x8x8xf32> to vector<2x8x8xf32>
    %cst_12 = arith.constant 4.000000e+00 : f32
    %35 = vector.broadcast %cst_12 : f32 to vector<2x8x8xf32>
    %36 = arith.divf %34, %35 : vector<2x8x8xf32>
    %c0_13 = arith.constant 0 : index
    %c0_14 = arith.constant 0 : index
    %c0_15 = arith.constant 0 : index
    %37 = vector.load %arg8[%c0_13, %c0_14, %c0_15] : memref<2x8x8xf32, #tpu.memory_space<vmem>>, vector<2x8x8xf32>
    tpu.vector_store %arg8[%c0_13, %c0_14, %c0_15], %36 {strides = array<i32>} : memref<2x8x8xf32, #tpu.memory_space<vmem>>, vector<2x8x8xf32>,
    "tpu.trace_start"() <{level = 10 : i32, message = "bqk,bkd->bqd"}> : () -> ()
    %cst_16 = arith.constant dense<0.000000e+00> : vector<8x8x16xf32>
    %38 = tpu.matmul %32, %18, %cst_16 {dimension_numbers = #tpu.dot_dimension_numbers<[2], [1], [1], [2], [0, 0, 0, 1, 1, 2], [0], [0]>} : vector<8x8x8xf32>, vector<8x8x16xf32>, vector<8x8x16xf32> -> vector<8x8x16xf32>
    "tpu.trace_stop"() : () -> ()
    %39 = vector.shape_cast %38 : vector<8x8x16xf32> to vector<2x4x8x16xf32>
    %40 = tpu.transpose %39, [2, 0, 1, 3] : vector<2x4x8x16xf32> -> vector<8x2x4x16xf32>
    %41 = vector.shape_cast %40 : vector<8x2x4x16xf32> to vector<16x64xf32>
    %c0_17 = arith.constant 0 : index
    %c0_18 = arith.constant 0 : index
    %42 = vector.load %arg4[%c0_17, %c0_18] : memref<64x192xf32, #tpu.memory_space<vmem>>, vector<64x128xf32>
    %c0_19 = arith.constant 0 : index
    %c128 = arith.constant 128 : index
    %43 = vector.load %arg4[%c0_19, %c128] : memref<64x192xf32, #tpu.memory_space<vmem>>, vector<64x64xf32>
    %c1 = arith.constant 1 : index
    %c0_20 = arith.constant 0 : index
    %44 = vector.load %arg6[%c1, %c0_20] : memref<3x192xf32, #tpu.memory_space<vmem>>, vector<1x128xf32>
    %c1_21 = arith.constant 1 : index
    %c128_22 = arith.constant 128 : index
    %45 = vector.load %arg6[%c1_21, %c128_22] : memref<3x192xf32, #tpu.memory_space<vmem>>, vector<1x64xf32>
    %c2 = arith.constant 2 : index
    %c0_23 = arith.constant 0 : index
    %46 = vector.load %arg6[%c2, %c0_23] : memref<3x192xf32, #tpu.memory_space<vmem>>, vector<1x64xf32>
    %c2_24 = arith.constant 2 : index
    %c64 = arith.constant 64 : index
    %47 = vector.load %arg6[%c2_24, %c64] : memref<3x192xf32, #tpu.memory_space<vmem>>, vector<1x64xf32>
    %c2_25 = arith.constant 2 : index
    %c128_26 = arith.constant 128 : index
    %48 = vector.load %arg6[%c2_25, %c128_26] : memref<3x192xf32, #tpu.memory_space<vmem>>, vector<1x64xf32>
    %cst_27 = arith.constant dense<0.000000e+00> : vector<16x64xf32>
    %49 = tpu.matmul %41, %43, %cst_27 {dimension_numbers = #tpu.dot_dimension_numbers<[1], [0], [0], [1], [0, 0, 1, 1], [], []>} : vector<16x64xf32>, vector<64x64xf32>, vector<16x64xf32> -> vector<16x64xf32>
    %50 = vector.broadcast %45 : vector<1x64xf32> to vector<16x64xf32>
    %51 = arith.addf %49, %50 : vector<16x64xf32>
    %52 = arith.addf %1, %51 : vector<16x64xf32>
    %cst_28 = arith.constant dense<0.000000e+00> : vector<16xf32>
    %53 = vector.multi_reduction <add>, %52, %cst_28 [1] : vector<16x64xf32> to vector<16xf32>
    %54 = vector.shape_cast %53 : vector<16xf32> to vector<16x1xf32>
    %cst_29 = arith.constant 6.400000e+01 : f32
    %55 = vector.broadcast %cst_29 : f32 to vector<16x1xf32>
    %56 = arith.divf %54, %55 : vector<16x1xf32>
    %57 = vector.broadcast %56 : vector<16x1xf32> to vector<16x64xf32>
    %58 = arith.subf %52, %57 : vector<16x64xf32>
    %59 = arith.mulf %58, %58 : vector<16x64xf32>
    %cst_30 = arith.constant dense<0.000000e+00> : vector<16xf32>
    %60 = vector.multi_reduction <add>, %59, %cst_30 [1] : vector<16x64xf32> to vector<16xf32>
    %61 = vector.shape_cast %60 : vector<16xf32> to vector<16x1xf32>
    %cst_31 = arith.constant 6.400000e+01 : f32
    %62 = vector.broadcast %cst_31 : f32 to vector<16x1xf32>
    %63 = arith.divf %61, %62 : vector<16x1xf32>
    %cst_32 = arith.constant 9.99999974E-6 : f32
    %64 = vector.broadcast %cst_32 : f32 to vector<16x1xf32>
    %65 = arith.addf %63, %64 : vector<16x1xf32>
    %66 = math.rsqrt %65 : vector<16x1xf32>
    %67 = vector.broadcast %66 : vector<16x1xf32> to vector<16x64xf32>
    %68 = arith.mulf %58, %67 : vector<16x64xf32>
    %69 = vector.broadcast %46 : vector<1x64xf32> to vector<16x64xf32>
    %70 = arith.mulf %68, %69 : vector<16x64xf32>
    %71 = vector.broadcast %47 : vector<1x64xf32> to vector<16x64xf32>
    %72 = arith.addf %70, %71 : vector<16x64xf32>
    %cst_33 = arith.constant dense<0.000000e+00> : vector<16x128xf32>
    %73 = tpu.matmul %72, %42, %cst_33 {dimension_numbers = #tpu.dot_dimension_numbers<[1], [0], [0], [1], [0, 0, 1, 1], [], []>} : vector<16x64xf32>, vector<64x128xf32>, vector<16x128xf32> -> vector<16x128xf32>
    %74 = vector.broadcast %44 : vector<1x128xf32> to vector<16x128xf32>
    %75 = arith.addf %73, %74 : vector<16x128xf32>
    %cst_34 = arith.constant 0.000000e+00 : f32
    %76 = vector.broadcast %cst_34 : f32 to vector<16x128xf32>
    %77 = arith.maximumf %75, %76 : vector<16x128xf32>
    %c0_35 = arith.constant 0 : index
    %c0_36 = arith.constant 0 : index
    %78 = vector.load %arg5[%c0_35, %c0_36] : memref<128x64xf32, #tpu.memory_space<vmem>>, vector<128x64xf32>
    %cst_37 = arith.constant dense<0.000000e+00> : vector<16x64xf32>
    %79 = tpu.matmul %77, %78, %cst_37 {dimension_numbers = #tpu.dot_dimension_numbers<[1], [0], [0], [1], [0, 0, 1, 1], [], []>} : vector<16x128xf32>, vector<128x64xf32>, vector<16x64xf32> -> vector<16x64xf32>
    %80 = vector.broadcast %48 : vector<1x64xf32> to vector<16x64xf32>
    %81 = arith.addf %79, %80 : vector<16x64xf32>
    %82 = arith.addf %72, %81 : vector<16x64xf32>
    %83 = vector.shape_cast %82 : vector<16x64xf32> to vector<8x2x64xf32>
    %84 = tpu.transpose %83, [1, 0, 2] : vector<8x2x64xf32> -> vector<2x8x64xf32>
    %85 = vector.extract_strided_slice %84 {offsets = [0, 0, 0], sizes = [1, 8, 64], strides = [1, 1, 1]} : vector<2x8x64xf32> to vector<1x8x64xf32>
    %86 = vector.shape_cast %85 : vector<1x8x64xf32> to vector<8x64xf32>
    %c0_38 = arith.constant 0 : index
    %c0_39 = arith.constant 0 : index
    %87 = vector.load %arg7[%c0_38, %c0_39] : memref<8x128xf32, #tpu.memory_space<vmem>>, vector<8x64xf32>
    tpu.vector_store %arg7[%c0_38, %c0_39], %86 {strides = array<i32>} : memref<8x128xf32, #tpu.memory_space<vmem>>, vector<8x64xf32>,
    %88 = vector.extract_strided_slice %84 {offsets = [1, 0, 0], sizes = [1, 8, 64], strides = [1, 1, 1]} : vector<2x8x64xf32> to vector<1x8x64xf32>
    %89 = vector.shape_cast %88 : vector<1x8x64xf32> to vector<8x64xf32>
    %c0_40 = arith.constant 0 : index
    %c64_41 = arith.constant 64 : index
    %90 = vector.load %arg7[%c0_40, %c64_41] : memref<8x128xf32, #tpu.memory_space<vmem>>, vector<8x64xf32>
    tpu.vector_store %arg7[%c0_40, %c64_41], %89 {strides = array<i32>} : memref<8x128xf32, #tpu.memory_space<vmem>>, vector<8x64xf32>,
    return
  }
  func.func @transform_0(%arg0: i32) -> (i32, i32) {
    %c0_i32 = arith.constant 0 : i32
    %c0_i32_0 = arith.constant 0 : i32
    %c0_i32_1 = arith.constant 0 : i32
    return %c0_i32, %c0_i32_0 : i32, i32
  }
  func.func @transform_1(%arg0: i32) -> (i32, i32, i32) {
    %c0_i32 = arith.constant 0 : i32
    %c0_i32_0 = arith.constant 0 : i32
    %c0_i32_1 = arith.constant 0 : i32
    %c0_i32_2 = arith.constant 0 : i32
    return %c0_i32, %c0_i32_0, %c0_i32_1 : i32, i32, i32
  }
  func.func @transform_2(%arg0: i32) -> (i32, i32) {
    %c0_i32 = arith.constant 0 : i32
    %c0_i32_0 = arith.constant 0 : i32
    %c0_i32_1 = arith.constant 0 : i32
    return %c0_i32, %c0_i32_0 : i32, i32
  }
  func.func @transform_3(%arg0: i32) -> (i32, i32) {
    %c0_i32 = arith.constant 0 : i32
    %c0_i32_0 = arith.constant 0 : i32
    %c0_i32_1 = arith.constant 0 : i32
    return %c0_i32, %c0_i32_0 : i32, i32
  }
  func.func @transform_4(%arg0: i32) -> (i32, i32) {
    %c0_i32 = arith.constant 0 : i32
    %c0_i32_0 = arith.constant 0 : i32
    %c0_i32_1 = arith.constant 0 : i32
    return %c0_i32, %c0_i32_0 : i32, i32
  }
  func.func @transform_5(%arg0: i32) -> (i32, i32) {
    %c0_i32 = arith.constant 0 : i32
    %c0_i32_0 = arith.constant 0 : i32
    %c0_i32_1 = arith.constant 0 : i32
    return %c0_i32, %c0_i32_0 : i32, i32
  }
  func.func @transform_6(%arg0: i32) -> (i32, i32) {
    %c0_i32 = arith.constant 0 : i32
    %c0_i32_0 = arith.constant 0 : i32
    %c0_i32_1 = arith.constant 0 : i32
    return %c0_i32, %c0_i32_0 : i32, i32
  }
  func.func @transform_7(%arg0: i32) -> (i32, i32, i32) {
    %c0_i32 = arith.constant 0 : i32
    %c0_i32_0 = arith.constant 0 : i32
    %c0_i32_1 = arith.constant 0 : i32
    %c0_i32_2 = arith.constant 0 : i32
    return %c0_i32, %c0_i32_0, %c0_i32_1 : i32, i32, i32
  }
}

</mosaic_0001>

<bundles_post_ra>
// kernel: transformer_decoder_layer.1
= control target key start
LH: loop header
LB: loop body
LE: loop exit
PB: predicated region body
PF: predicated region fallthrough
CT: control target
= control target key end

     0   :  { %v3619_v7 = vmov 0.0   ;;  %s4360_s0 = inlined_call_operand.vmem [shape: f32[16,128], index: 0, kind: input, shape index: {}]   ;;  %s4361_s1 = inlined_call_operand.vmem [shape: f32[8,1,8], index: 1, kind: input, shape index: {}]   ;;  %s4362_s2 = inlined_call_operand.vmem [shape: f32[128,192], index: 2, kind: input, shape index: {}]   ;;  %s4363_s3 = inlined_call_operand.vmem [shape: f32[64,192], index: 3, kind: input, shape index: {}]   ;;  %s4364_s4 = inlined_call_operand.vmem [shape: f32[128,64], index: 4, kind: input, shape index: {}]   ;;  %s4365_s5 = inlined_call_operand.vmem [shape: f32[3,192], index: 5, kind: input, shape index: {}]   ;;  %s4366_s6 = inlined_call_operand.vmem [shape: f32[8,128], index: 6, kind: output, shape index: {0}]   ;;  %s4367_s7 = inlined_call_operand.hbm [shape: f32[2,8,8], index: 7, kind: output, shape index: {1}]  }
   0x1   :  { %v29_v0 = vld [vmem:[%s4362_s2 + $0x8] sm:$0xff]  ;;  %v31_v1 = vld [vmem:[%s4362_s2 + $0x18] sm:$0xff]  ;;  %v28_v2 = vld [vmem:[%s4362_s2] sm:$0xff]  ;;  %136 = vmatprep.mubr.f32.mxu0 %v3619_v7  ;;  %3294 = vmatprep.subr.mxu1 %v3619_v7 }
   0x2   :  { %v3447_v3 = vpack.c.bf16 %v31_v1, %v29_v0  ;;  %v30_v4 = vld [vmem:[%s4362_s2 + $0x10] sm:$0xff]  ;;  %v33_v5 = vld [vmem:[%s4362_s2 + $0x28] sm:$0xff]  ;;  %v35_v6 = vld [vmem:[%s4362_s2 + $0x38] sm:$0xff] }
   0x3   :  { %v3449_v8 = vpack.c.bf16 %v30_v4, %v28_v2  ;;  %v3451_v9 = vpack.c.bf16 %v35_v6, %v33_v5  ;;  %v32_v10 = vld [vmem:[%s4362_s2 + $0x20] sm:$0xff]  ;;  %v34_v11 = vld [vmem:[%s4362_s2 + $0x30] sm:$0xff]  ;;  %v37_v12 = vld [vmem:[%s4362_s2 + $0x48] sm:$0xff] }
   0x4   :  { %3448 = vmatprep.subr.bf16.mxu0 %v3447_v3  ;;  %v39_v13 = vld [vmem:[%s4362_s2 + $0x58] sm:$0xff]  ;;  %v3453_v14 = vpack.c.bf16 %v34_v11, %v32_v10  ;;  %v36_v16 = vld [vmem:[%s4362_s2 + $0x40] sm:$0xff]  ;;  %v38_v17 = vld [vmem:[%s4362_s2 + $0x50] sm:$0xff] }
   0x5   :  { %3450 = vmatpush1.bf16.msra.mxu0 %v3449_v8  ;;  %v3455_v15 = vpack.c.bf16 %v39_v13, %v37_v12  ;;  %v41_v18 = vld [vmem:[%s4362_s2 + $0x68] sm:$0xff]  ;;  %v43_v19 = vld [vmem:[%s4362_s2 + $0x78] sm:$0xff]  ;;  %v3457_v20 = vpack.c.bf16 %v38_v17, %v36_v16  ;;  %v40_v22 = vld [vmem:[%s4362_s2 + $0x60] sm:$0xff] }
   0x6   :  { %3452 = vmatprep.subr.bf16.mxu0 %v3451_v9  ;;  %v3459_v21 = vpack.c.bf16 %v43_v19, %v41_v18  ;;  %v42_v23 = vld [vmem:[%s4362_s2 + $0x70] sm:$0xff]  ;;  %v45_v24 = vld [vmem:[%s4362_s2 + $0x88] sm:$0xff]  ;;  %v47_v25 = vld [vmem:[%s4362_s2 + $0x98] sm:$0xff] }
   0x9   :  { %3454 = vmatpush1.bf16.msra.mxu0 %v3453_v14 }
   0xa   :  { %3456 = vmatprep.subr.bf16.mxu0 %v3455_v15 }
   0xb   :  { %13 = vsyncpa [#allocation3], 0  ;;  %v3461_v26 = vpack.c.bf16 %v42_v23, %v40_v22  ;;  %v3463_v27 = vpack.c.bf16 %v47_v25, %v45_v24  ;;  %v44_v28 = vld [vmem:[%s4362_s2 + $0x80] sm:$0xff]  ;;  %v46_v29 = vld [vmem:[%s4362_s2 + $0x90] sm:$0xff]  ;;  %v62_v51 = vlaneseq  ;;  %s3620_s24 = smov 96   ;;  %s3621_s25 = smov 112  }
   0xc   :  { %v49_v30 = vld [vmem:[%s4362_s2 + $0xa8] sm:$0xff]  ;;  %v51_v31 = vld [vmem:[%s4362_s2 + $0xb8] sm:$0xff]  ;;  %v3465_v32 = vpack.c.bf16 %v46_v29, %v44_v28  ;;  %v48_v34 = vld [vmem:[%s4362_s2 + $0xa0] sm:$0xff]  ;;  %s3622_s26 = smov 80   ;;  %s3623_s27 = smov 64   ;;  %vm3626_vm0 = vmmov 0  }
   0xd   :  { %3458 = vmatpush1.bf16.msra.mxu0 %v3457_v20  ;;  %v3467_v33 = vpack.c.bf16 %v51_v31, %v49_v30  ;;  %v50_v35 = vld [vmem:[%s4362_s2 + $0xb0] sm:$0xff]  ;;  %v53_v36 = vld [vmem:[%s4362_s2 + $0xc8] sm:$0xff]  ;;  %v55_v37 = vld [vmem:[%s4362_s2 + $0xd8] sm:$0xff]  ;;  %v3779_v52 = vshrl.u32 %v62_v51, 7  ;;  %v3624_v62 = vmov 1983009808   ;;  %3296 = vmatprep.mubr.msk.f32.mxu1 %vm3626_vm0, %v3619_v7 }
   0xe   :  { %3460 = vmatprep.subr.bf16.mxu0 %v3459_v21  ;;  %v3469_v38 = vpack.c.bf16 %v50_v35, %v48_v34  ;;  %v3471_v39 = vpack.c.bf16 %v55_v37, %v53_v36  ;;  %v52_v40 = vld [vmem:[%s4362_s2 + $0xc0] sm:$0xff]  ;;  %v54_v41 = vld [vmem:[%s4362_s2 + $0xd0] sm:$0xff]  ;;  %v57_v42 = vld [vmem:[%s4362_s2 + $0xe8] sm:$0xff]  ;;  %v172_v63 = vunpack.c.l.s4 %v3624_v62  ;;  %v3625_v2 = vmov 1934713408   ;;  %s3627_s13 = smov 16  }
   0xf   :  { %v59_v43 = vld [vmem:[%s4362_s2 + $0xf8] sm:$0xff]  ;;  %v3473_v44 = vpack.c.bf16 %v54_v41, %v52_v40  ;;  %v56_v46 = vld [vmem:[%s4362_s2 + $0xe0] sm:$0xff]  ;;  %v58_v47 = vld [vmem:[%s4362_s2 + $0xf0] sm:$0xff]  ;;  %v64_v53 = vsub.s32 0, %v3779_v52  ;;  %v204_v3 = vunpack.c.l.s4 %v3625_v2  ;;  %vm1085_vm1 = vcmask 130048   ;;  %s3628_s14 = smov 48  }
  0x10   :  { %v3475_v45 = vpack.c.bf16 %v59_v43, %v57_v42  ;;  %v3477_v48 = vpack.c.bf16 %v58_v47, %v56_v46  ;;  %v26_v49 = vld [vmem:[%s4360_s0] sm:$0xff]  ;;  %v27_v50 = vld [vmem:[%s4360_s0 + $0x8] sm:$0xff]  ;;  %v173_v4 = vunpack.c.0.s8 %v172_v63  ;;  %vm1694_vm2 = vcmask 64512   ;;  %s3629_s15 = smov 32  }
  0x11   :  { %3462 = vmatpush1.bf16.msra.mxu0 %v3461_v26  ;;  %v3785_v54 = vld [vmem:[%s4365_s5] ss:$4 sm:$0x3]  ;;  %v205_v8 = vunpack.c.0.s8 %v204_v3  ;;  %vm2684_vm3 = vcmask 261120   ;;  %vm2687_vm4 = vcmask 392192   ;;  %vm2714_vm5 = vcmask 523264  }
  0x12   :  { %3464 = vmatprep.subr.bf16.mxu0 %v3463_v27  ;;  %v65_v55 = vrot.slane %v3785_v54, %v64_v53  ;;  %v3804_v11 = vsub.s32 %v173_v4, %v3779_v52 }
  0x13   :  { %v3808_v20 = vsub.s32 %v205_v8, %v3779_v52 }
  0x15   :  { %3466 = vmatpush1.bf16.msra.mxu0 %v3465_v32 }
  0x16   :  { %3468 = vmatprep.subr.bf16.mxu0 %v3467_v33 }
  0x19   :  { %3470 = vmatpush1.bf16.msra.mxu0 %v3469_v38 }
  0x1a   :  { %3472 = vmatprep.subr.bf16.mxu0 %v3471_v39 }
  0x1d   :  { %3474 = vmatpush1.bf16.msra.mxu0 %v3473_v44 }
  0x1e   :  { %3476 = vmatprep.subr.bf16.mxu0 %v3475_v45 }
  0x21   :  { %3478 = vmatpush1.bf16.msra.mxu0 %v3477_v48 }
  0x22   :  { %3339 = vmatprep.subr.mxu0 %v3619_v7 }
  0x24   :  { %137 = vmatmul.mubr.f32.vlgmr.msra.gmra.mrb[0].mxu0 %v26_v49 }
  0x25   :  { %142 = vmatprep.mubr.f32.mxu0 %v3619_v7 }
  0x28   :  { %143 = vmatmul.mubr.f32.gmra.mrb[2].mxu0 %v27_v50 }
  0x29   :  { %3341 = vmatprep.mubr.msk.f32.mxu0 %vm3626_vm0, %v3619_v7 }
  0xf7   :  { %v138_v56 = vpop.f32.mrb[0].mxu0 }
  0xf8   :  { %v139_v57 = vadd.f32 %v138_v56, %v65_v55  ;;  %v3788_v58 = vpop.f32.mrb[1].mxu0 }
  0xfa   :  { %157 = vrot.lane.b32.xlu1 %v139_v57, %s3620_s24  ;;  %151 = vrot.lane.b32.xlu0 %v139_v57, %s3621_s25 }
  0xfb   :  { %v144_v59 = vpop.f32.mrb[2].mxu0 }
  0xfc   :  { %v145_v60 = vadd.f32 %v144_v59, %v65_v55  ;;  %v3792_v61 = vpop.f32.mrb[3].mxu0 }
  0xfe   :  { %159 = vrot.lane.b32.xlu1 %v145_v60, %s3620_s24  ;;  %153 = vrot.lane.b32.xlu0 %v145_v60, %s3621_s25 }
 0x102   :  { %165 = vrot.lane.b32.xlu1 %v145_v60, %s3622_s26  ;;  %163 = vrot.lane.b32.xlu0 %v139_v57, %s3622_s26 }
 0x106   :  { %443 = vrot.lane.b32.xlu1 %v145_v60, %s3623_s27  ;;  %441 = vrot.lane.b32.xlu0 %v139_v57, %s3623_s27 }
 0x16c   :  { %v158_v0 = vpop.permute.xlu1 %157  ;;  %v152_v1 = vpop.permute.xlu0 %151 }
 0x16d   :  { %445 = vrot.lane.b32.xlu0 %v152_v1, %s3623_s27  ;;  %v169_v12 = vcombine.low %v139_v57, %v158_v0  ;;  %v170_v13 = vcombine.high %v139_v57, %v158_v0 }
 0x16f   :  { %v177_v27 = vrot.slane %v169_v12, %v3804_v11  ;;  %v184_v28 = vrot.slane %v170_v13, %v3804_v11 }
 0x170   :  { %v160_v5 = vpop.permute.xlu1 %159  ;;  %v154_v6 = vpop.permute.xlu0 %153 }
 0x171   :  { %449 = vrot.lane.b32.xlu0 %v158_v0, %s3623_s27  ;;  %447 = vrot.lane.b32.xlu1 %v154_v6, %s3623_s27  ;;  %v237_v9 = vcombine.low %v145_v60, %v160_v5  ;;  %v238_v10 = vcombine.high %v145_v60, %v160_v5 }
 0x173   :  { %v245_v21 = vrot.slane %v237_v9, %v3804_v11  ;;  %v252_v22 = vrot.slane %v238_v10, %v3804_v11 }
 0x174   :  { %v166_v14 = vpop.permute.xlu1 %165  ;;  %v164_v15 = vpop.permute.xlu0 %163 }
 0x175   :  { %v253_v16 = vcombine.low %v154_v6, %v166_v14  ;;  %v254_v17 = vcombine.high %v154_v6, %v166_v14  ;;  %v185_v18 = vcombine.low %v152_v1, %v164_v15  ;;  %v186_v19 = vcombine.high %v152_v1, %v164_v15  ;;  %451 = vrot.lane.b32.xlu1 %v160_v5, %s3623_s27 }
 0x176   :  { %453 = vrot.lane.b32.xlu0 %v164_v15, %s3623_s27 }
 0x177   :  { %v261_v23 = vrot.slane %v253_v16, %v3804_v11  ;;  %v268_v24 = vrot.slane %v254_v17, %v3804_v11  ;;  %v193_v25 = vrot.slane %v185_v18, %v3804_v11  ;;  %v200_v26 = vrot.slane %v186_v19, %v3804_v11 }
 0x179   :  { %v269_v29 = vcombine.low %v245_v21, %v261_v23  ;;  %v270_v30 = vcombine.high %v245_v21, %v261_v23  ;;  %v285_v31 = vcombine.low %v252_v22, %v268_v24  ;;  %v286_v32 = vcombine.high %v252_v22, %v268_v24  ;;  %455 = vrot.lane.b32.xlu1 %v166_v14, %s3623_s27 }
 0x17a   :  { %v201_v33 = vcombine.low %v177_v27, %v193_v25  ;;  %v202_v34 = vcombine.high %v177_v27, %v193_v25  ;;  %v217_v35 = vcombine.low %v184_v28, %v200_v26  ;;  %v218_v36 = vcombine.high %v184_v28, %v200_v26  ;;  %v442_v28 = vpop.permute.xlu0 %441 }
 0x17b   :  { %v277_v37 = vrot.slane %v269_v29, %v3808_v20  ;;  %v284_v38 = vrot.slane %v270_v30, %v3808_v20  ;;  %v293_v39 = vrot.slane %v285_v31, %v3808_v20  ;;  %v300_v40 = vrot.slane %v286_v32, %v3808_v20  ;;  %v444_v29 = vpop.permute.xlu1 %443 }
 0x17c   :  { %v209_v41 = vrot.slane %v201_v33, %v3808_v20  ;;  %v216_v42 = vrot.slane %v202_v34, %v3808_v20  ;;  %v225_v43 = vrot.slane %v217_v35, %v3808_v20  ;;  %v232_v44 = vrot.slane %v218_v36, %v3808_v20 }
 0x17d   :  { %v321_v45 = vcombine.low %v277_v37, %v293_v39  ;;  %v329_v46 = vcombine.low %v284_v38, %v300_v40  ;;  %v3172_v47 = vcombine.high %v277_v37, %v293_v39  ;;  %v3173_v48 = vcombine.high %v284_v38, %v300_v40 }
 0x17e   :  { %v305_v49 = vcombine.low %v209_v41, %v225_v43  ;;  %v313_v50 = vcombine.low %v216_v42, %v232_v44  ;;  %v3170_v51 = vcombine.high %v209_v41, %v225_v43  ;;  %v3171_v53 = vcombine.high %v216_v42, %v232_v44 }
 0x17f   :  { %v396_v55 = vrot.slane %v3172_v47, %v3804_v11  ;;  %v404_v56 = vrot.slane %v3173_v48, %v3804_v11  ;;  %v328_v1 = vrot.slane %v321_v45, %v3804_v11  ;;  %v336_v2 = vrot.slane %v329_v46, %v3804_v11 }
 0x180   :  { %v380_v57 = vrot.slane %v3170_v51, %v3804_v11  ;;  %v388_v59 = vrot.slane %v3171_v53, %v3804_v11  ;;  %v312_v60 = vrot.slane %v305_v49, %v3804_v11  ;;  %v320_v62 = vrot.slane %v313_v50, %v3804_v11 }
 0x181   :  { %v421_v63 = vcombine.low %v396_v55, %v404_v56  ;;  %v422_v0 = vcombine.high %v396_v55, %v404_v56  ;;  %v353_v8 = vcombine.low %v328_v1, %v336_v2  ;;  %v354_v9 = vcombine.high %v328_v1, %v336_v2 }
 0x182   :  { %v405_v3 = vcombine.low %v380_v57, %v388_v59  ;;  %v406_v4 = vcombine.high %v380_v57, %v388_v59  ;;  %v337_v5 = vcombine.low %v312_v60, %v320_v62  ;;  %v338_v6 = vcombine.high %v312_v60, %v320_v62 }
 0x183   :  { %v3841_v10 = vrot.slane %v421_v63, %v3808_v20  ;;  %v3844_v12 = vrot.slane %v422_v0, %v3808_v20  ;;  %v3859_v17 = vrot.slane %v353_v8, %v3808_v20  ;;  %v3862_v18 = vrot.slane %v354_v9, %v3808_v20 }
 0x184   :  { %v3847_v13 = vrot.slane %v337_v5, %v3808_v20  ;;  %v3850_v14 = vrot.slane %v338_v6, %v3808_v20  ;;  %v3853_v15 = vrot.slane %v405_v3, %v3808_v20  ;;  %v3856_v16 = vrot.slane %v406_v4, %v3808_v20 }
 0x186   :  { %v437_v19 = vcombine.low %v3853_v15, %v3841_v10  ;;  %v438_v21 = vcombine.high %v3853_v15, %v3841_v10  ;;  %v439_v22 = vcombine.low %v3856_v16, %v3844_v12  ;;  %v440_v23 = vcombine.high %v3856_v16, %v3844_v12  ;;  %v3182_v10 = vld [vmem:[%s4361_s1] ss:$0 sm:$0xff] }
 0x187   :  { %v369_v24 = vcombine.low %v3847_v13, %v3859_v17  ;;  %v370_v25 = vcombine.high %v3847_v13, %v3859_v17  ;;  %v371_v26 = vcombine.low %v3850_v14, %v3862_v18  ;;  %v372_v27 = vcombine.high %v3850_v14, %v3862_v18 }
 0x1df   :  { %v446_v30 = vpop.permute.xlu0 %445 }
 0x1e3   :  { %v448_v31 = vpop.permute.xlu1 %447  ;;  %v450_v32 = vpop.permute.xlu0 %449 }
 0x1e4   :  { %v465_v33 = vcombine.low %v442_v28, %v450_v32  ;;  %v466_v34 = vcombine.high %v442_v28, %v450_v32 }
 0x1e6   :  { %v473_v41 = vrot.slane %v465_v33, %v3804_v11  ;;  %v480_v42 = vrot.slane %v466_v34, %v3804_v11 }
 0x1e7   :  { %v452_v35 = vpop.permute.xlu1 %451 }
 0x1e8   :  { %v454_v36 = vpop.permute.xlu0 %453  ;;  %v533_v39 = vcombine.low %v444_v29, %v452_v35  ;;  %v534_v40 = vcombine.high %v444_v29, %v452_v35 }
 0x1e9   :  { %v481_v37 = vcombine.low %v446_v30, %v454_v36  ;;  %v482_v38 = vcombine.high %v446_v30, %v454_v36 }
 0x1ea   :  { %v541_v53 = vrot.slane %v533_v39, %v3804_v11  ;;  %v548_v55 = vrot.slane %v534_v40, %v3804_v11 }
 0x1eb   :  { %v489_v43 = vrot.slane %v481_v37, %v3804_v11  ;;  %v496_v44 = vrot.slane %v482_v38, %v3804_v11  ;;  %v456_v45 = vpop.permute.xlu1 %455 }
 0x1ec   :  { %v549_v46 = vcombine.low %v448_v31, %v456_v45  ;;  %v550_v47 = vcombine.high %v448_v31, %v456_v45 }
 0x1ed   :  { %v497_v48 = vcombine.low %v473_v41, %v489_v43  ;;  %v498_v49 = vcombine.high %v473_v41, %v489_v43  ;;  %v513_v50 = vcombine.low %v480_v42, %v496_v44  ;;  %v514_v51 = vcombine.high %v480_v42, %v496_v44 }
 0x1ee   :  { %v557_v56 = vrot.slane %v549_v46, %v3804_v11  ;;  %v564_v57 = vrot.slane %v550_v47, %v3804_v11 }
 0x1ef   :  { %v505_v59 = vrot.slane %v497_v48, %v3808_v20  ;;  %v512_v60 = vrot.slane %v498_v49, %v3808_v20  ;;  %v521_v62 = vrot.slane %v513_v50, %v3808_v20  ;;  %v528_v63 = vrot.slane %v514_v51, %v3808_v20 }
 0x1f0   :  { %v565_v0 = vcombine.low %v541_v53, %v557_v56  ;;  %v566_v1 = vcombine.high %v541_v53, %v557_v56  ;;  %v581_v2 = vcombine.low %v548_v55, %v564_v57  ;;  %v582_v3 = vcombine.high %v548_v55, %v564_v57 }
 0x1f1   :  { %v601_v4 = vcombine.low %v505_v59, %v521_v62  ;;  %v609_v5 = vcombine.low %v512_v60, %v528_v63  ;;  %v3174_v43 = vcombine.high %v505_v59, %v521_v62  ;;  %v3175_v44 = vcombine.high %v512_v60, %v528_v63 }
 0x1f2   :  { %v573_v6 = vrot.slane %v565_v0, %v3808_v20  ;;  %v580_v8 = vrot.slane %v566_v1, %v3808_v20  ;;  %v589_v9 = vrot.slane %v581_v2, %v3808_v20  ;;  %v596_v28 = vrot.slane %v582_v3, %v3808_v20  ;;  %v3184_v0 = vld [vmem:[%s4361_s1 + $0x2] ss:$0 sm:$0xff] }
 0x1f3   :  { %v608_v29 = vrot.slane %v601_v4, %v3804_v11  ;;  %v616_v30 = vrot.slane %v609_v5, %v3804_v11  ;;  %v676_v50 = vrot.slane %v3174_v43, %v3804_v11  ;;  %v684_v51 = vrot.slane %v3175_v44, %v3804_v11  ;;  %v3185_v5 = vld [vmem:[%s4361_s1 + $0x3] ss:$0 sm:$0xff]  ;;  %v3189_v44 = vld [vmem:[%s4361_s1 + $0x7] ss:$0 sm:$0xff] }
 0x1f4   :  { %v617_v31 = vcombine.low %v573_v6, %v589_v9  ;;  %v625_v32 = vcombine.low %v580_v8, %v596_v28  ;;  %v3176_v39 = vcombine.high %v573_v6, %v589_v9  ;;  %v3177_v40 = vcombine.high %v580_v8, %v596_v28 }
 0x1f5   :  { %v633_v35 = vcombine.low %v608_v29, %v616_v30  ;;  %v634_v45 = vcombine.high %v608_v29, %v616_v30  ;;  %v702_v60 = vcombine.high %v676_v50, %v684_v51  ;;  %v3186_v29 = vld [vmem:[%s4361_s1 + $0x4] ss:$0 sm:$0xff] }
 0x1f6   :  { %v624_v33 = vrot.slane %v617_v31, %v3804_v11  ;;  %v632_v34 = vrot.slane %v625_v32, %v3804_v11  ;;  %v692_v46 = vrot.slane %v3176_v39, %v3804_v11  ;;  %v700_v47 = vrot.slane %v3177_v40, %v3804_v11  ;;  %v3188_v39 = vld [vmem:[%s4361_s1 + $0x6] ss:$0 sm:$0xff] }
 0x1f7   :  { %v641_v37 = vrot.slane %v633_v35, %v3808_v20  ;;  %v648_v53 = vrot.slane %v634_v45, %v3808_v20  ;;  %v716_v14 = vrot.slane %v702_v60, %v3808_v20 }
 0x1f8   :  { %v649_v36 = vcombine.low %v624_v33, %v632_v34  ;;  %v650_v41 = vcombine.high %v624_v33, %v632_v34  ;;  %v717_v55 = vcombine.low %v692_v46, %v700_v47  ;;  %v718_v17 = vcombine.high %v692_v46, %v700_v47  ;;  %v3187_v34 = vld [vmem:[%s4361_s1 + $0x5] ss:$0 sm:$0xff] }
 0x1fa   :  { %v657_v38 = vrot.slane %v649_v36, %v3808_v20  ;;  %v664_v49 = vrot.slane %v650_v41, %v3808_v20  ;;  %v725_v59 = vrot.slane %v717_v55, %v3808_v20  ;;  %v732_v62 = vrot.slane %v718_v17, %v3808_v20 }
 0x1fc   :  { %v665_v42 = vcombine.low %v641_v37, %v657_v38  ;;  %v666_v48 = vcombine.high %v641_v37, %v657_v38  ;;  %v667_v56 = vcombine.low %v648_v53, %v664_v49  ;;  %v668_v57 = vcombine.high %v648_v53, %v664_v49 }
 0x1fd   :  { %v735_v18 = vcombine.low %v716_v14, %v732_v62 }
 0x1fe   :  { %3295 = vmatpush3.xpose.msk.msra.mxu1 %vm1085_vm1, %v665_v42 }
 0x1ff   :  { %3299 = vmatprep.subr.mxu1 %v3619_v7 }
 0x201   :  { %3297 = vmatmul.mubr.msk.f32.vlgmr.msra.gmra.mrb[0].mxu1 %vm1085_vm1, %v369_v24  ;;  %v701_v24 = vcombine.low %v676_v50, %v684_v51  ;;  %v68_v50 = vsub.s32 1, %v3779_v52 }
 0x202   :  { %3300 = vmatpush3.xpose.msk.msra.mxu1 %vm1085_vm1, %v666_v48  ;;  %3301 = vmatprep.mubr.msk.f32.mxu1 %vm3626_vm0, %v3619_v7 }
 0x203   :  { %3304 = vmatprep.subr.mxu1 %v3619_v7  ;;  %v709_v13 = vrot.slane %v701_v24, %v3808_v20  ;;  %v69_v51 = vrot.slane %v3785_v54, %v68_v50 }
 0x205   :  { %3302 = vmatmul.mubr.msk.f32.vlgmr.msra.gmra.mrb[2].mxu1 %vm1085_vm1, %v370_v25  ;;  %v733_v25 = vcombine.low %v709_v13, %v725_v59  ;;  %v4011_v53 = vadd.f32 %v3788_v58, %v69_v51  ;;  %v4018_v55 = vadd.f32 %v3792_v61, %v69_v51 }
 0x206   :  { %3305 = vmatpush3.xpose.msk.msra.mxu1 %vm1085_vm1, %v667_v56  ;;  %3306 = vmatprep.mubr.msk.f32.mxu1 %vm3626_vm0, %v3619_v7 }
 0x207   :  { %3309 = vmatprep.subr.mxu1 %v3619_v7 }
 0x209   :  { %3307 = vmatmul.mubr.msk.f32.vlgmr.msra.gmra.mrb[4].mxu1 %vm1085_vm1, %v371_v26  ;;  %v734_v26 = vcombine.high %v709_v13, %v725_v59 }
 0x20a   :  { %3310 = vmatpush3.xpose.msk.msra.mxu1 %vm1085_vm1, %v668_v57  ;;  %3311 = vmatprep.mubr.msk.f32.mxu1 %vm3626_vm0, %v3619_v7 }
 0x20b   :  { %3314 = vmatprep.subr.mxu1 %v3619_v7 }
 0x20d   :  { %3312 = vmatmul.mubr.msk.f32.vlgmr.msra.gmra.mrb[6].mxu1 %vm1085_vm1, %v372_v27  ;;  %v3183_v27 = vld [vmem:[%s4361_s1 + $0x1] ss:$0 sm:$0xff] }
 0x20e   :  { %3315 = vmatpush3.xpose.msk.msra.mxu1 %vm1085_vm1, %v733_v25  ;;  %3316 = vmatprep.mubr.msk.f32.mxu1 %vm3626_vm0, %v3619_v7 }
 0x20f   :  { %3319 = vmatprep.subr.mxu1 %v3619_v7 }
 0x211   :  { %3317 = vmatmul.mubr.msk.f32.vlgmr.msra.gmra.mrb[8].mxu1 %vm1085_vm1, %v437_v19  ;;  %v736_v19 = vcombine.high %v716_v14, %v732_v62 }
 0x212   :  { %3320 = vmatpush3.xpose.msk.msra.mxu1 %vm1085_vm1, %v734_v26  ;;  %3321 = vmatprep.mubr.msk.f32.mxu1 %vm3626_vm0, %v3619_v7 }
 0x213   :  { %3324 = vmatprep.subr.mxu1 %v3619_v7 }
 0x215   :  { %3322 = vmatmul.mubr.msk.f32.vlgmr.msra.gmra.mrb[10].mxu1 %vm1085_vm1, %v438_v21 }
 0x216   :  { %3325 = vmatpush3.xpose.msk.msra.mxu1 %vm1085_vm1, %v735_v18  ;;  %3326 = vmatprep.mubr.msk.f32.mxu1 %vm3626_vm0, %v3619_v7 }
 0x217   :  { %3329 = vmatprep.subr.mxu1 %v3619_v7 }
 0x219   :  { %3327 = vmatmul.mubr.msk.f32.vlgmr.msra.gmra.mrb[12].mxu1 %vm1085_vm1, %v439_v22 }
 0x21a   :  { %3330 = vmatpush3.xpose.msk.msra.mxu1 %vm1085_vm1, %v736_v19  ;;  %3331 = vmatprep.mubr.msk.f32.mxu1 %vm3626_vm0, %v3619_v7 }
 0x21b   :  { %3334 = vmatprep.subr.mxu1 %v3619_v7 }
 0x21d   :  { %3332 = vmatmul.mubr.msk.f32.vlgmr.msra.gmra.mrb[14].mxu1 %vm1085_vm1, %v440_v23 }
 0x21e   :  { %3336 = vmatprep.mubr.msk.f32.mxu1 %vm3626_vm0, %v3619_v7 }
 0x2d4   :  { %v1158_v15 = vpop.f32.mrb[0].mxu1 }
 0x2d5   :  { %v1159_v21 = vadd.f32 %v3182_v10, %v1158_v15  ;;  %v3298_v22 = vpop.f32.mrb[1].mxu1 }
 0x2d7   :  { %v1695_v63 = vsel %vm1694_vm2, %v1159_v21, -inf }
 0x2d8   :  { %1696 = vmax.xlane.f32.xlu0 %v1695_v63  ;;  %v1234_v12 = vpop.f32.mrb[2].mxu1 }
 0x2d9   :  { %v1235_v16 = vadd.f32 %v3183_v27, %v1234_v12  ;;  %v3303_v23 = vpop.f32.mrb[3].mxu1 }
 0x2db   :  { %v1698_v1 = vsel %vm1694_vm2, %v1235_v16, -inf }
 0x2dc   :  { %1699 = vmax.xlane.f32.xlu1 %v1698_v1  ;;  %v1310_v2 = vpop.f32.mrb[4].mxu1 }
 0x2dd   :  { %v1311_v3 = vadd.f32 %v3184_v0, %v1310_v2  ;;  %v3308_v4 = vpop.f32.mrb[5].mxu1 }
 0x2df   :  { %v1701_v6 = vsel %vm1694_vm2, %v1311_v3, -inf }
 0x2e0   :  { %1702 = vmax.xlane.f32.xlu0 %v1701_v6  ;;  %v1386_v8 = vpop.f32.mrb[6].mxu1 }
 0x2e1   :  { %v1387_v9 = vadd.f32 %v3185_v5, %v1386_v8  ;;  %v3313_v28 = vpop.f32.mrb[7].mxu1 }
 0x2e3   :  { %v1704_v30 = vsel %vm1694_vm2, %v1387_v9, -inf }
 0x2e4   :  { %1705 = vmax.xlane.f32.xlu0 %v1704_v30  ;;  %v1462_v31 = vpop.f32.mrb[8].mxu1 }
 0x2e5   :  { %v1463_v32 = vadd.f32 %v3186_v29, %v1462_v31  ;;  %v3318_v33 = vpop.f32.mrb[9].mxu1 }
 0x2e7   :  { %v1707_v35 = vsel %vm1694_vm2, %v1463_v32, -inf }
 0x2e8   :  { %1708 = vmax.xlane.f32.xlu1 %v1707_v35  ;;  %v1538_v36 = vpop.f32.mrb[10].mxu1 }
 0x2e9   :  { %v1539_v37 = vadd.f32 %v3187_v34, %v1538_v36  ;;  %v3323_v38 = vpop.f32.mrb[11].mxu1 }
 0x2eb   :  { %v1710_v40 = vsel %vm1694_vm2, %v1539_v37, -inf }
 0x2ec   :  { %1711 = vmax.xlane.f32.xlu0 %v1710_v40  ;;  %v1614_v41 = vpop.f32.mrb[12].mxu1 }
 0x2ed   :  { %v1615_v42 = vadd.f32 %v3188_v39, %v1614_v41  ;;  %v3328_v43 = vpop.f32.mrb[13].mxu1 }
 0x2ef   :  { %v1713_v45 = vsel %vm1694_vm2, %v1615_v42, -inf }
 0x2f0   :  { %1714 = vmax.xlane.f32.xlu1 %v1713_v45  ;;  %v1690_v46 = vpop.f32.mrb[14].mxu1 }
 0x2f1   :  { %v1691_v47 = vadd.f32 %v3189_v44, %v1690_v46  ;;  %v3333_v48 = vpop.f32.mrb[15].mxu1 }
 0x2f3   :  { %v1716_v49 = vsel %vm1694_vm2, %v1691_v47, -inf }
 0x2f4   :  { %1717 = vmax.xlane.f32.xlu0 %v1716_v49 }
 0x301   :  { %739 = vrot.lane.b32.xlu1 %v4011_v53, %s3621_s25 }
 0x305   :  { %745 = vrot.lane.b32.xlu1 %v4011_v53, %s3620_s24 }
 0x309   :  { %747 = vrot.lane.b32.xlu1 %v4018_v55, %s3620_s24 }
 0x30a   :  { %741 = vrot.lane.b32.xlu0 %v4018_v55, %s3621_s25 }
 0x30d   :  { %753 = vrot.lane.b32.xlu1 %v4018_v55, %s3622_s26 }
 0x30e   :  { %751 = vrot.lane.b32.xlu0 %v4011_v53, %s3622_s26 }
 0x365   :  { %v1697_v52 = vpop.xlane.xlu0 %1696 }
 0x366   :  { %v1719_v54 = vsub.f32 %v1159_v21, %v1697_v52 }
 0x368   :  { %v1727_v58 = vmul.f32 1.442695, %v1719_v54 }
 0x369   :  { %v1700_v56 = vpop.xlane.xlu1 %1699 }
 0x36a   :  { %3557 = vpow2.f32 %v1727_v58  ;;  %v1720_v24 = vsub.f32 %v1235_v16, %v1700_v56 }
 0x36c   :  { %v1729_v61 = vmul.f32 1.442695, %v1720_v24 }
 0x36d   :  { %v1703_v57 = vpop.xlane.xlu0 %1702 }
 0x36e   :  { %3559 = vpow2.f32 %v1729_v61  ;;  %v1721_v59 = vsub.f32 %v1311_v3, %v1703_v57 }
 0x370   :  { %v1731_v13 = vmul.f32 1.442695, %v1721_v59 }
 0x371   :  { %v1706_v17 = vpop.xlane.xlu0 %1705 }
 0x372   :  { %3561 = vpow2.f32 %v1731_v13  ;;  %v1722_v25 = vsub.f32 %v1387_v9, %v1706_v17 }
 0x374   :  { %v4028_v60 = vpop.eup %3557  ;;  %v1733_v26 = vmul.f32 1.442695, %v1722_v25 }
 0x375   :  { %v1709_v62 = vpop.xlane.xlu1 %1708  ;;  %v1743_v14 = vsel %vm1694_vm2, %v4028_v60, 0.0 }
 0x376   :  { %3563 = vpow2.f32 %v1733_v26  ;;  %v1723_v18 = vsub.f32 %v1463_v32, %v1709_v62  ;;  %1744 = vadd.xlane.f32.xlu1 %v1743_v14 }
 0x378   :  { %v4032_v19 = vpop.eup %3559  ;;  %v1735_v10 = vmul.f32 1.442695, %v1723_v18 }
 0x379   :  { %v1712_v15 = vpop.xlane.xlu0 %1711  ;;  %v1746_v21 = vsel %vm1694_vm2, %v4032_v19, 0.0 }
 0x37a   :  { %3565 = vpow2.f32 %v1735_v10  ;;  %v1724_v22 = vsub.f32 %v1539_v37, %v1712_v15  ;;  %1747 = vadd.xlane.f32.xlu0 %v1746_v21 }
 0x37c   :  { %v4036_v27 = vpop.eup %3561  ;;  %v1737_v63 = vmul.f32 1.442695, %v1724_v22 }
 0x37d   :  { %v1715_v12 = vpop.xlane.xlu1 %1714  ;;  %v1749_v16 = vsel %vm1694_vm2, %v4036_v27, 0.0 }
 0x37e   :  { %3567 = vpow2.f32 %v1737_v63  ;;  %v1725_v23 = vsub.f32 %v1615_v42, %v1715_v12  ;;  %1750 = vadd.xlane.f32.xlu1 %v1749_v16 }
 0x380   :  { %v4040_v0 = vpop.eup %3563  ;;  %v1739_v1 = vmul.f32 1.442695, %v1725_v23 }
 0x381   :  { %v740_v2 = vpop.permute.xlu1 %739  ;;  %v1718_v3 = vpop.xlane.xlu0 %1717  ;;  %v1752_v4 = vsel %vm1694_vm2, %v4040_v0, 0.0 }
 0x382   :  { %3569 = vpow2.f32 %v1739_v1  ;;  %v1726_v5 = vsub.f32 %v1691_v47, %v1718_v3  ;;  %1753 = vadd.xlane.f32.xlu0 %v1752_v4 }
 0x384   :  { %v4044_v6 = vpop.eup %3565  ;;  %v1741_v8 = vmul.f32 1.442695, %v1726_v5 }
 0x385   :  { %v746_v9 = vpop.permute.xlu1 %745  ;;  %v742_v28 = vpop.permute.xlu0 %741  ;;  %v1755_v29 = vsel %vm1694_vm2, %v4044_v6, 0.0 }
 0x386   :  { %3571 = vpow2.f32 %v1741_v8  ;;  %1756 = vadd.xlane.f32.xlu0 %v1755_v29  ;;  %v757_v31 = vcombine.low %v4011_v53, %v746_v9  ;;  %v758_v32 = vcombine.high %v4011_v53, %v746_v9 }
 0x388   :  { %v4048_v30 = vpop.eup %3567  ;;  %v765_v40 = vrot.slane %v757_v31, %v3804_v11  ;;  %v772_v41 = vrot.slane %v758_v32, %v3804_v11 }
 0x389   :  { %v748_v33 = vpop.permute.xlu1 %747  ;;  %v752_v34 = vpop.permute.xlu0 %751  ;;  %v1758_v35 = vsel %vm1694_vm2, %v4048_v30, 0.0 }
 0x38a   :  { %v773_v36 = vcombine.low %v740_v2, %v752_v34  ;;  %v774_v37 = vcombine.high %v740_v2, %v752_v34  ;;  %1759 = vadd.xlane.f32.xlu1 %v1758_v35  ;;  %v825_v38 = vcombine.low %v4018_v55, %v748_v33  ;;  %v826_v44 = vcombine.high %v4018_v55, %v748_v33 }
 0x38c   :  { %v4055_v39 = vpop.eup %3569  ;;  %v781_v42 = vrot.slane %v773_v36, %v3804_v11  ;;  %v788_v43 = vrot.slane %v774_v37, %v3804_v11  ;;  %v833_v51 = vrot.slane %v825_v38, %v3804_v11  ;;  %v840_v61 = vrot.slane %v826_v44, %v3804_v11 }
 0x38d   :  { %v754_v45 = vpop.permute.xlu1 %753  ;;  %v1761_v46 = vsel %vm1694_vm2, %v4055_v39, 0.0 }
 0x38e   :  { %v789_v47 = vcombine.low %v765_v40, %v781_v42  ;;  %v790_v48 = vcombine.high %v765_v40, %v781_v42  ;;  %v805_v49 = vcombine.low %v772_v41, %v788_v43  ;;  %v806_v50 = vcombine.high %v772_v41, %v788_v43  ;;  %1762 = vadd.xlane.f32.xlu0 %v1761_v46 }
 0x38f   :  { %v841_v53 = vcombine.low %v742_v28, %v754_v45  ;;  %v842_v52 = vcombine.high %v742_v28, %v754_v45 }
 0x390   :  { %v4065_v54 = vpop.eup %3571  ;;  %v797_v58 = vrot.slane %v789_v47, %v3808_v20  ;;  %v804_v56 = vrot.slane %v790_v48, %v3808_v20  ;;  %v813_v55 = vrot.slane %v805_v49, %v3808_v20  ;;  %v820_v24 = vrot.slane %v806_v50, %v3808_v20 }
 0x391   :  { %v849_v57 = vrot.slane %v841_v53, %v3804_v11  ;;  %v856_v59 = vrot.slane %v842_v52, %v3804_v11  ;;  %v1764_v13 = vsel %vm1694_vm2, %v4065_v54, 0.0 }
 0x392   :  { %v893_v17 = vcombine.low %v797_v58, %v813_v55  ;;  %v901_v25 = vcombine.low %v804_v56, %v820_v24  ;;  %v3178_v26 = vcombine.high %v797_v58, %v813_v55  ;;  %v3179_v62 = vcombine.high %v804_v56, %v820_v24  ;;  %1765 = vadd.xlane.f32.xlu0 %v1764_v13 }
 0x393   :  { %v857_v14 = vcombine.low %v833_v51, %v849_v57  ;;  %v858_v18 = vcombine.high %v833_v51, %v849_v57  ;;  %v873_v10 = vcombine.low %v840_v61, %v856_v59  ;;  %v874_v15 = vcombine.high %v840_v61, %v856_v59 }
 0x394   :  { %v900_v21 = vrot.slane %v893_v17, %v3804_v11  ;;  %v908_v22 = vrot.slane %v901_v25, %v3804_v11  ;;  %v968_v63 = vrot.slane %v3178_v26, %v3804_v11  ;;  %v976_v12 = vrot.slane %v3179_v62, %v3804_v11 }
 0x395   :  { %v865_v16 = vrot.slane %v857_v14, %v3808_v20  ;;  %v872_v23 = vrot.slane %v858_v18, %v3808_v20  ;;  %v881_v1 = vrot.slane %v873_v10, %v3808_v20  ;;  %v888_v2 = vrot.slane %v874_v15, %v3808_v20 }
 0x396   :  { %v926_v3 = vcombine.high %v900_v21, %v908_v22  ;;  %v993_v4 = vcombine.low %v968_v63, %v976_v12  ;;  %v994_v5 = vcombine.high %v968_v63, %v976_v12  ;;  %v925_v31 = vcombine.low %v900_v21, %v908_v22 }
 0x397   :  { %v909_v8 = vcombine.low %v865_v16, %v881_v1  ;;  %v917_v9 = vcombine.low %v872_v23, %v888_v2  ;;  %v3180_v28 = vcombine.high %v865_v16, %v881_v1  ;;  %v3181_v29 = vcombine.high %v872_v23, %v888_v2 }
 0x398   :  { %v933_v41 = vrot.slane %v925_v31, %v3808_v20  ;;  %v940_v42 = vrot.slane %v926_v3, %v3808_v20  ;;  %v1001_v47 = vrot.slane %v993_v4, %v3808_v20  ;;  %v4098_v48 = vrot.slane %v994_v5, %v3808_v20 }
 0x399   :  { %v916_v32 = vrot.slane %v909_v8, %v3804_v11  ;;  %v924_v33 = vrot.slane %v917_v9, %v3804_v11  ;;  %v984_v34 = vrot.slane %v3180_v28, %v3804_v11  ;;  %v992_v35 = vrot.slane %v3181_v29, %v3804_v11 }
 0x39b   :  { %v941_v36 = vcombine.low %v916_v32, %v924_v33  ;;  %v942_v37 = vcombine.high %v916_v32, %v924_v33  ;;  %v1009_v38 = vcombine.low %v984_v34, %v992_v35  ;;  %v1010_v40 = vcombine.high %v984_v34, %v992_v35 }
 0x39d   :  { %v949_v43 = vrot.slane %v941_v36, %v3808_v20  ;;  %v956_v44 = vrot.slane %v942_v37, %v3808_v20  ;;  %v1017_v45 = vrot.slane %v1009_v38, %v3808_v20  ;;  %v4094_v46 = vrot.slane %v1010_v40, %v3808_v20  ;;  %v2699_v37 = vld [vmem:[%s4363_s3 + $0x18] sm:$0xff] }
 0x39f   :  { %v957_v49 = vcombine.low %v933_v41, %v949_v43  ;;  %v958_v50 = vcombine.high %v933_v41, %v949_v43  ;;  %v959_v51 = vcombine.low %v940_v42, %v956_v44  ;;  %v960_v53 = vcombine.high %v940_v42, %v956_v44 }
 0x3a0   :  { %v1025_v52 = vcombine.low %v1001_v47, %v1017_v45  ;;  %v1026_v58 = vcombine.high %v1001_v47, %v1017_v45  ;;  %v1027_v56 = vcombine.low %v4098_v48, %v4094_v46  ;;  %v1028_v55 = vcombine.high %v4098_v48, %v4094_v46 }
 0x3a1   :  { %3335 = vmatpush3.msra.mxu1 %v957_v49  ;;  %3340 = vmatpush3.msra.mxu0 %v958_v50 }
 0x3a2   :  { %3344 = vmatprep.subr.mxu1 %v3619_v7  ;;  %3349 = vmatprep.subr.mxu0 %v3619_v7 }
 0x403   :  { %v1745_v24 = vpop.xlane.xlu1 %1744 }
 0x404   :  { %3573 = vrcp.f32 %v1745_v24 }
 0x407   :  { %v1748_v61 = vpop.xlane.xlu0 %1747 }
 0x408   :  { %3575 = vrcp.f32 %v1748_v61 }
 0x40b   :  { %v1751_v57 = vpop.xlane.xlu1 %1750 }
 0x40c   :  { %3577 = vrcp.f32 %v1751_v57 }
 0x40e   :  { %v3574_v59 = vpop.eup %3573 }
 0x40f   :  { %v1775_v13 = vmul.f32 %v3574_v59, %v4028_v60  ;;  %v1754_v17 = vpop.xlane.xlu0 %1753 }
 0x410   :  { %3579 = vrcp.f32 %v1754_v17 }
 0x411   :  { %3337 = vmatmul.mubr.msk.f32.vlgmr.msra.gmra.mrb[16].mxu1 %vm1694_vm2, %v1775_v13 }
 0x412   :  { %v3576_v25 = vpop.eup %3575  ;;  %3345 = vmatpush3.msra.mxu1 %v959_v51  ;;  %3346 = vmatprep.mubr.msk.f32.mxu1 %vm3626_vm0, %v3619_v7 }
 0x413   :  { %v1776_v26 = vmul.f32 %v3576_v25, %v4032_v19  ;;  %v1757_v62 = vpop.xlane.xlu0 %1756  ;;  %3354 = vmatprep.subr.mxu1 %v3619_v7  ;;  %v1783_v19 = vsel %vm1694_vm2, %v1775_v13, 0.0 }
 0x414   :  { %3581 = vrcp.f32 %v1757_v62 }
 0x415   :  { %3342 = vmatmul.mubr.msk.f32.vlgmr.msra.gmra.mrb[4].mxu0 %vm1694_vm2, %v1776_v26  ;;  %v1784_v60 = vsel %vm1694_vm2, %v1776_v26, 0.0 }
 0x416   :  { %v3578_v14 = vpop.eup %3577  ;;  %3350 = vmatpush3.msra.mxu0 %v960_v53  ;;  %3351 = vmatprep.mubr.msk.f32.mxu0 %vm3626_vm0, %v3619_v7  ;;  %v1785_v22 = vadd.f32 %v1784_v60, %v1783_v19 }
 0x417   :  { %v1777_v18 = vmul.f32 %v3578_v14, %v4036_v27  ;;  %v1760_v10 = vpop.xlane.xlu1 %1759  ;;  %3359 = vmatprep.subr.mxu0 %v3619_v7 }
 0x418   :  { %3583 = vrcp.f32 %v1760_v10 }
 0x419   :  { %v1786_v15 = vsel %vm1694_vm2, %v1777_v18, 0.0  ;;  %3347 = vmatmul.mubr.msk.f32.vlgmr.msra.gmra.mrb[18].mxu1 %vm1694_vm2, %v1777_v18 }
 0x41a   :  { %v3580_v21 = vpop.eup %3579  ;;  %3355 = vmatpush3.msra.mxu1 %v1025_v52  ;;  %3356 = vmatprep.mubr.msk.f32.mxu1 %vm3626_vm0, %v3619_v7  ;;  %v1787_v27 = vadd.f32 %v1786_v15, %v1785_v22 }
 0x41b   :  { %v1778_v63 = vmul.f32 %v3580_v21, %v4040_v0  ;;  %v1763_v12 = vpop.xlane.xlu0 %1762  ;;  %3364 = vmatprep.subr.mxu1 %v3619_v7 }
 0x41c   :  { %3585 = vrcp.f32 %v1763_v12 }
 0x41d   :  { %3352 = vmatmul.mubr.msk.f32.vlgmr.msra.gmra.mrb[6].mxu0 %vm1694_vm2, %v1778_v63  ;;  %v1788_v16 = vsel %vm1694_vm2, %v1778_v63, 0.0 }
 0x41e   :  { %v3582_v23 = vpop.eup %3581  ;;  %3360 = vmatpush3.msra.mxu0 %v1026_v58  ;;  %3361 = vmatprep.mubr.msk.f32.mxu0 %vm3626_vm0, %v3619_v7  ;;  %v1789_v1 = vadd.f32 %v1788_v16, %v1787_v27 }
 0x41f   :  { %v1779_v2 = vmul.f32 %v3582_v23, %v4044_v6  ;;  %v1766_v3 = vpop.xlane.xlu0 %1765  ;;  %3369 = vmatprep.subr.mxu0 %v3619_v7 }
 0x420   :  { %3587 = vrcp.f32 %v1766_v3  ;;  %v1798_v0 = vmul.f32 0.25, %v1789_v1 }
 0x421   :  { %3357 = vmatmul.mubr.msk.f32.vlgmr.msra.gmra.mrb[20].mxu1 %vm1694_vm2, %v1779_v2  ;;  %v1790_v28 = vsel %vm1694_vm2, %v1779_v2, 0.0 }
 0x422   :  { %v3584_v4 = vpop.eup %3583  ;;  %3365 = vmatpush3.msra.mxu1 %v1027_v56  ;;  %3366 = vmatprep.mubr.msk.f32.mxu1 %vm3626_vm0, %v3619_v7  ;;  %1800 = vst.msk [vmem:[#allocation2] sm:$0xff] %vm1694_vm2, %v1798_v0 }
 0x423   :  { %v1780_v5 = vmul.f32 %v3584_v4, %v4048_v30 }
 0x425   :  { %3362 = vmatmul.mubr.msk.f32.vlgmr.msra.gmra.mrb[8].mxu0 %vm1694_vm2, %v1780_v5  ;;  %v1791_v6 = vsel %vm1694_vm2, %v1780_v5, 0.0 }
 0x426   :  { %v3586_v8 = vpop.eup %3585  ;;  %3370 = vmatpush3.msra.mxu0 %v1028_v55  ;;  %3371 = vmatprep.mubr.msk.f32.mxu0 %vm3626_vm0, %v3619_v7  ;;  %v1792_v32 = vadd.f32 %v1791_v6, %v1790_v28 }
 0x427   :  { %v1781_v9 = vmul.f32 %v3586_v8, %v4055_v39  ;;  %v2698_v39 = vld [vmem:[%s4363_s3 + $0x8] sm:$0xff] }
 0x428   :  { %v3479_v38 = vpack.c.bf16 %v2699_v37, %v2698_v39 }
 0x429   :  { %v1793_v29 = vsel %vm1694_vm2, %v1781_v9, 0.0  ;;  %3367 = vmatmul.mubr.msk.f32.vlgmr.msra.gmra.mrb[22].mxu1 %vm1694_vm2, %v1781_v9 }
 0x42a   :  { %v3588_v31 = vpop.eup %3587  ;;  %v1794_v33 = vadd.f32 %v1793_v29, %v1792_v32  ;;  %3480 = vmatprep.subr.bf16.mxu0 %v3479_v38 }
 0x42b   :  { %v1782_v30 = vmul.f32 %v3588_v31, %v4065_v54 }
 0x42d   :  { %3372 = vmatmul.mubr.msk.f32.vlgmr.msra.gmra.mrb[10].mxu0 %vm1694_vm2, %v1782_v30  ;;  %v1795_v34 = vsel %vm1694_vm2, %v1782_v30, 0.0 }
 0x42e   :  { %v1796_v35 = vadd.f32 %v1795_v34, %v1794_v33  ;;  %3482 = vmatpush3.bf16.msra.mxu0 %v3479_v38 }
 0x430   :  { %v1799_v36 = vmul.f32 0.25, %v1796_v35  ;;  %v2700_v35 = vld [vmem:[%s4363_s3 + $0x28] sm:$0xff] }
 0x432   :  { %1801 = vst.msk [vmem:[#allocation2 + $0x8] sm:$0xff] %vm1694_vm2, %v1799_v36  ;;  %v2701_v36 = vld [vmem:[%s4363_s3 + $0x38] sm:$0xff] }
 0x4e4   :  { %v1871_v54 = vpop.f32.mrb[16].mxu1 }
 0x4e5   :  { %v3338_v40 = vpop.f32.mrb[17].mxu1 }
 0x4e6   :  { %v3483_v40 = vpack.c.bf16 %v2701_v36, %v2700_v35 }
 0x4e8   :  { %v1944_v41 = vpop.f32.mrb[4].mxu0  ;;  %3484 = vmatprep.subr.bf16.mxu0 %v3483_v40 }
 0x4e9   :  { %v3343_v42 = vpop.f32.mrb[5].mxu0  ;;  %3486 = vmatpush3.bf16.msra.mxu0 %v3483_v40  ;;  %v3594_v40 = vld [vmem:[%s4360_s0] sm:$0xff] }
 0x4ec   :  { %v2017_v43 = vpop.f32.mrb[18].mxu1 }
 0x4ed   :  { %v2386_v44 = vcombine.low %v1871_v54, %v2017_v43  ;;  %v2387_v45 = vcombine.high %v1871_v54, %v2017_v43  ;;  %v3348_v46 = vpop.f32.mrb[19].mxu1 }
 0x4ef   :  { %v2394_v51 = vrot.slane %v2386_v44, %v3804_v11  ;;  %v2401_v53 = vrot.slane %v2387_v45, %v3804_v11 }
 0x4f0   :  { %v2090_v47 = vpop.f32.mrb[6].mxu0 }
 0x4f1   :  { %v2402_v48 = vcombine.low %v1944_v41, %v2090_v47  ;;  %v2403_v49 = vcombine.high %v1944_v41, %v2090_v47  ;;  %v3353_v50 = vpop.f32.mrb[7].mxu0 }
 0x4f3   :  { %v2410_v52 = vrot.slane %v2402_v48, %v3804_v11  ;;  %v2417_v58 = vrot.slane %v2403_v49, %v3804_v11  ;;  %v2702_v49 = vld [vmem:[%s4363_s3 + $0x48] sm:$0xff] }
 0x4f4   :  { %v2163_v56 = vpop.f32.mrb[20].mxu1 }
 0x4f5   :  { %v2418_v55 = vcombine.low %v2394_v51, %v2410_v52  ;;  %v2419_v24 = vcombine.high %v2394_v51, %v2410_v52  ;;  %v2434_v61 = vcombine.low %v2401_v53, %v2417_v58  ;;  %v2435_v57 = vcombine.high %v2401_v53, %v2417_v58  ;;  %v3358_v59 = vpop.f32.mrb[21].mxu1 }
 0x4f7   :  { %v2426_v60 = vrot.slane %v2418_v55, %v3808_v20  ;;  %v2433_v18 = vrot.slane %v2419_v24, %v3808_v20  ;;  %v2442_v10 = vrot.slane %v2434_v61, %v3808_v20  ;;  %v2449_v19 = vrot.slane %v2435_v57, %v3808_v20 }
 0x4f8   :  { %v2236_v13 = vpop.f32.mrb[8].mxu0 }
 0x4f9   :  { %v3363_v17 = vpop.f32.mrb[9].mxu0  ;;  %v2450_v1 = vcombine.high %v2426_v60, %v3619_v7  ;;  %v2451_v2 = vcombine.high %v2433_v18, %v3619_v7  ;;  %v2452_v3 = vcombine.high %v2442_v10, %v3619_v7  ;;  %v2453_v0 = vcombine.high %v2449_v19, %v3619_v7 }
 0x4fb   :  { %v2522_v32 = vcombine.low %v2426_v60, %v2450_v1  ;;  %v2538_v30 = vcombine.low %v2433_v18, %v2451_v2  ;;  %v2590_v33 = vcombine.low %v2442_v10, %v2452_v3  ;;  %v2606_v34 = vcombine.low %v2449_v19, %v2453_v0 }
 0x4fc   :  { %v2309_v25 = vpop.f32.mrb[22].mxu1 }
 0x4fd   :  { %v2454_v26 = vcombine.low %v2163_v56, %v2309_v25  ;;  %v2455_v62 = vcombine.high %v2163_v56, %v2309_v25  ;;  %v3368_v14 = vpop.f32.mrb[23].mxu1  ;;  %v2597_v45 = vrot.slane %v2590_v33, %v3804_v11  ;;  %v2613_v46 = vrot.slane %v2606_v34, %v3804_v11  ;;  %v3214_v34 = vld [vmem:[%s4365_s5 + $0x5] ss:$0 sm:$0xff] }
 0x4fe   :  { %v2529_v47 = vrot.slane %v2522_v32, %v3804_v11  ;;  %v2545_v48 = vrot.slane %v2538_v30, %v3804_v11 }
 0x4ff   :  { %v2462_v12 = vrot.slane %v2454_v26, %v3804_v11  ;;  %v2469_v27 = vrot.slane %v2455_v62, %v3804_v11 }
 0x500   :  { %v2382_v15 = vpop.f32.mrb[10].mxu0 }
 0x501   :  { %v2470_v21 = vcombine.low %v2236_v13, %v2382_v15  ;;  %v2471_v22 = vcombine.high %v2236_v13, %v2382_v15  ;;  %v3373_v63 = vpop.f32.mrb[11].mxu0  ;;  %v2704_v15 = vld [vmem:[%s4363_s3 + $0x68] sm:$0xff] }
 0x503   :  { %v2478_v16 = vrot.slane %v2470_v21, %v3804_v11  ;;  %v2485_v23 = vrot.slane %v2471_v22, %v3804_v11  ;;  %v2705_v21 = vld [vmem:[%s4363_s3 + $0x78] sm:$0xff] }
 0x504   :  { %v3491_v3 = vpack.c.bf16 %v2705_v21, %v2704_v15  ;;  %v2928_v21 = vld [vmem:[%s4364_s4 + $0x20] sm:$0xff] }
 0x505   :  { %v2486_v4 = vcombine.low %v2462_v12, %v2478_v16  ;;  %v2487_v5 = vcombine.high %v2462_v12, %v2478_v16  ;;  %v2502_v8 = vcombine.low %v2469_v27, %v2485_v23  ;;  %v2503_v6 = vcombine.high %v2469_v27, %v2485_v23 }
 0x507   :  { %v2494_v9 = vrot.slane %v2486_v4, %v3808_v20  ;;  %v2501_v28 = vrot.slane %v2487_v5, %v3808_v20  ;;  %v2510_v29 = vrot.slane %v2502_v8, %v3808_v20  ;;  %v2517_v31 = vrot.slane %v2503_v6, %v3808_v20 }
 0x509   :  { %v2518_v39 = vcombine.high %v2494_v9, %v3619_v7  ;;  %v2519_v37 = vcombine.high %v2501_v28, %v3619_v7  ;;  %v2520_v38 = vcombine.high %v2510_v29, %v3619_v7  ;;  %v2521_v54 = vcombine.high %v2517_v31, %v3619_v7  ;;  %v2703_v7 = vld [vmem:[%s4363_s3 + $0x58] sm:$0xff] }
 0x50a   :  { %v3487_v58 = vpack.c.bf16 %v2703_v7, %v2702_v49 }
 0x50b   :  { %v2530_v41 = vcombine.low %v2494_v9, %v2518_v39  ;;  %v2546_v42 = vcombine.low %v2501_v28, %v2519_v37  ;;  %v2598_v43 = vcombine.low %v2510_v29, %v2520_v38  ;;  %v2614_v44 = vcombine.low %v2517_v31, %v2521_v54  ;;  %v3593_v38 = vld [vmem:[%s4360_s0 + $0x8] sm:$0xff] }
 0x50c   :  { %3488 = vmatprep.subr.bf16.mxu0 %v3487_v58 }
 0x50d   :  { %v2605_v50 = vrot.slane %v2598_v43, %v3804_v11  ;;  %v2621_v51 = vrot.slane %v2614_v44, %v3804_v11  ;;  %v2537_v53 = vrot.slane %v2530_v41, %v3804_v11  ;;  %v2553_v52 = vrot.slane %v2546_v42, %v3804_v11  ;;  %3490 = vmatpush3.bf16.msra.mxu0 %v3487_v58  ;;  %v4230_v44 = vld [vmem:[%s4365_s5 + $0x2] ss:$0 sm:$0xff] }
 0x50e   :  { %3492 = vmatprep.subr.bf16.mxu0 %v3491_v3  ;;  %v2690_v58 = vld [vmem:[%s4363_s3] sm:$0xff] }
 0x50f   :  { %v2622_v56 = vcombine.low %v2597_v45, %v2605_v50  ;;  %v2638_v55 = vcombine.low %v2613_v46, %v2621_v51  ;;  %v2554_v24 = vcombine.low %v2529_v47, %v2537_v53  ;;  %v2570_v61 = vcombine.low %v2545_v48, %v2553_v52 }
 0x510   :  { %v2555_v57 = vcombine.high %v2529_v47, %v2537_v53  ;;  %v2571_v59 = vcombine.high %v2545_v48, %v2553_v52  ;;  %v2623_v13 = vcombine.high %v2597_v45, %v2605_v50  ;;  %v2639_v17 = vcombine.high %v2613_v46, %v2621_v51 }
 0x511   :  { %v2630_v25 = vrot.slane %v2622_v56, %v3808_v20  ;;  %v2646_v26 = vrot.slane %v2638_v55, %v3808_v20  ;;  %v2562_v62 = vrot.slane %v2554_v24, %v3808_v20  ;;  %v2578_v14 = vrot.slane %v2570_v61, %v3808_v20  ;;  %3494 = vmatpush3.bf16.msra.mxu0 %v3491_v3  ;;  %v2691_v56 = vld [vmem:[%s4363_s3 + $0x10] sm:$0xff]  ;;  %v2692_v55 = vld [vmem:[%s4363_s3 + $0x20] sm:$0xff] }
 0x512   :  { %v2569_v60 = vrot.slane %v2555_v57, %v3808_v20  ;;  %v2585_v18 = vrot.slane %v2571_v59, %v3808_v20  ;;  %v2637_v10 = vrot.slane %v2623_v13, %v3808_v20  ;;  %v2653_v19 = vrot.slane %v2639_v17, %v3808_v20  ;;  %v2693_v61 = vld [vmem:[%s4363_s3 + $0x30] sm:$0xff]  ;;  %v2694_v59 = vld [vmem:[%s4363_s3 + $0x40] sm:$0xff] }
 0x513   :  { %v2655_v22 = vcombine.high %v2630_v25, %v2646_v26  ;;  %v2587_v63 = vcombine.high %v2562_v62, %v2578_v14  ;;  %v2654_v12 = vcombine.low %v2630_v25, %v2646_v26  ;;  %v2586_v27 = vcombine.low %v2562_v62, %v2578_v14  ;;  %v2695_v13 = vld [vmem:[%s4363_s3 + $0x50] sm:$0xff]  ;;  %v2696_v25 = vld [vmem:[%s4363_s3 + $0x60] sm:$0xff] }
 0x514   :  { %v2589_v16 = vcombine.high %v2569_v60, %v2585_v18  ;;  %v2588_v23 = vcombine.low %v2569_v60, %v2585_v18  ;;  %v2656_v1 = vcombine.low %v2637_v10, %v2653_v19  ;;  %v2657_v2 = vcombine.high %v2637_v10, %v2653_v19  ;;  %v2697_v26 = vld [vmem:[%s4363_s3 + $0x70] sm:$0xff]  ;;  %v2924_v14 = vld [vmem:[%s4364_s4] sm:$0xff]  ;;  %v2925_v60 = vld [vmem:[%s4364_s4 + $0x8] sm:$0xff] }
 0x515   :  { %2662 = vrot.lane.b32.xlu0 %v2655_v22, %s3627_s13  ;;  %2660 = vrot.lane.b32.xlu1 %v2587_v63, %s3627_s13  ;;  %v3495_v24 = vpack.c.bf16 %v2691_v56, %v2690_v58  ;;  %v3499_v57 = vpack.c.bf16 %v2693_v61, %v2692_v55  ;;  %v3503_v17 = vpack.c.bf16 %v2695_v13, %v2694_v59  ;;  %v2926_v18 = vld [vmem:[%s4364_s4 + $0x10] sm:$0xff]  ;;  %v2927_v19 = vld [vmem:[%s4364_s4 + $0x18] sm:$0xff] }
 0x516   :  { %v3507_v62 = vpack.c.bf16 %v2697_v26, %v2696_v25  ;;  %v3511_v10 = vpack.c.bf16 %v2925_v60, %v2924_v14  ;;  %v3515_v15 = vpack.c.bf16 %v2927_v19, %v2926_v18  ;;  %v2929_v22 = vld [vmem:[%s4364_s4 + $0x28] sm:$0xff]  ;;  %v2934_v3 = vld [vmem:[%s4364_s4 + $0x50] sm:$0xff] }
 0x517   :  { %3496 = vmatprep.subr.bf16.mxu0 %v3495_v24  ;;  %v3519_v63 = vpack.c.bf16 %v2929_v22, %v2928_v21 }
 0x518   :  { %3512 = vmatprep.subr.bf16.mxu1 %v3511_v10 }
 0x519   :  { %2676 = vrot.lane.b32.xlu0 %v2589_v16, %s3628_s14  ;;  %2668 = vrot.lane.b32.xlu1 %v2588_v23, %s3629_s15  ;;  %v2932_v23 = vld [vmem:[%s4364_s4 + $0x40] sm:$0xff] }
 0x51a   :  { %3514 = vmatpush3.bf16.msra.mxu1 %v3511_v10 }
 0x51b   :  { %3516 = vmatprep.subr.bf16.mxu1 %v3515_v15 }
 0x51d   :  { %2670 = vrot.lane.b32.xlu1 %v2656_v1, %s3629_s15  ;;  %v2933_v1 = vld [vmem:[%s4364_s4 + $0x48] sm:$0xff] }
 0x51e   :  { %3518 = vmatpush3.bf16.msra.mxu1 %v3515_v15 }
 0x51f   :  { %3520 = vmatprep.subr.bf16.mxu1 %v3519_v63 }
 0x521   :  { %2678 = vrot.lane.b32.xlu1 %v2657_v2, %s3628_s14  ;;  %v3527_v2 = vpack.c.bf16 %v2933_v1, %v2932_v23 }
 0x522   :  { %3522 = vmatpush3.bf16.msra.mxu1 %v3519_v63 }
 0x587   :  { %v2663_v0 = vpop.permute.xlu0 %2662  ;;  %v2661_v4 = vpop.permute.xlu1 %2660 }
 0x588   :  { %v2682_v5 = vsel %vm1085_vm1, %v2586_v27, %v2661_v4  ;;  %v2683_v31 = vsel %vm1085_vm1, %v2654_v12, %v2663_v0  ;;  %v2930_v12 = vld [vmem:[%s4364_s4 + $0x30] sm:$0xff]  ;;  %v2931_v27 = vld [vmem:[%s4364_s4 + $0x38] sm:$0xff] }
 0x589   :  { %v3523_v16 = vpack.c.bf16 %v2931_v27, %v2930_v12  ;;  %v2935_v0 = vld [vmem:[%s4364_s4 + $0x58] sm:$0xff] }
 0x58a   :  { %v3531_v4 = vpack.c.bf16 %v2935_v0, %v2934_v3 }
 0x58b   :  { %v2677_v8 = vpop.permute.xlu0 %2676  ;;  %v2669_v6 = vpop.permute.xlu1 %2668  ;;  %3524 = vmatprep.subr.bf16.mxu1 %v3523_v16 }
 0x58c   :  { %v2685_v9 = vsel %vm2684_vm3, %v2682_v5, %v2669_v6  ;;  %3526 = vmatpush3.bf16.msra.mxu1 %v3523_v16  ;;  %v2936_v5 = vld [vmem:[%s4364_s4 + $0x60] sm:$0xff] }
 0x58d   :  { %v2688_v28 = vsel %vm2687_vm4, %v2685_v9, %v2677_v8  ;;  %3528 = vmatprep.subr.bf16.mxu1 %v3527_v2  ;;  %v2937_v8 = vld [vmem:[%s4364_s4 + $0x68] sm:$0xff] }
 0x58e   :  { %3390 = vmatprep.mubr.msk.f32.mxu0 %vm2714_vm5, %v2688_v28  ;;  %v3535_v6 = vpack.c.bf16 %v2937_v8, %v2936_v5 }
 0x58f   :  { %v2671_v29 = vpop.permute.xlu1 %2670 }
 0x590   :  { %v2686_v32 = vsel %vm2684_vm3, %v2683_v31, %v2671_v29  ;;  %3530 = vmatpush3.bf16.msra.mxu1 %v3527_v2 }
 0x591   :  { %3532 = vmatprep.subr.bf16.mxu1 %v3531_v4 }
 0x593   :  { %v2679_v30 = vpop.permute.xlu1 %2678 }
 0x594   :  { %v2689_v33 = vsel %vm2687_vm4, %v2686_v32, %v2679_v30  ;;  %3534 = vmatpush3.bf16.msra.mxu1 %v3531_v4 }
 0x595   :  { %3391 = vmatmul.mubr.msk.f32.vlgmr.msra.gmra.mrb[12].mxu0 %vm2714_vm5, %v2689_v33  ;;  %3536 = vmatprep.subr.bf16.mxu1 %v3535_v6 }
 0x596   :  { %3498 = vmatpush3.bf16.msra.mxu0 %v3495_v24 }
 0x597   :  { %3500 = vmatprep.subr.bf16.mxu0 %v3499_v57 }
 0x598   :  { %3538 = vmatpush3.bf16.msra.mxu1 %v3535_v6 }
 0x59a   :  { %3502 = vmatpush3.bf16.msra.mxu0 %v3499_v57 }
 0x59b   :  { %3504 = vmatprep.subr.bf16.mxu0 %v3503_v17 }
 0x59e   :  { %3506 = vmatpush3.bf16.msra.mxu0 %v3503_v17 }
 0x59f   :  { %3508 = vmatprep.subr.bf16.mxu0 %v3507_v62 }
 0x5a2   :  { %3510 = vmatpush3.bf16.msra.mxu0 %v3507_v62 }
 0x668   :  { %v3392_v35 = vpop.f32.mrb[12].mxu0 }
 0x669   :  { %v2793_v36 = vadd.f32 %v3392_v35, %v3214_v34  ;;  %v2787_v39 = vpop.f32.mrb[13].mxu0 }
 0x66a   :  { %v2788_v37 = vadd.f32 %v3214_v34, %v2787_v39 }
 0x66b   :  { %v2797_v54 = vadd.f32 %v3593_v38, %v2793_v36 }
 0x66c   :  { %v2796_v41 = vadd.f32 %v3594_v40, %v2788_v37 }
 0x66d   :  { %v2801_v42 = vsel %vm2714_vm5, %v2797_v54, 0.0 }
 0x66e   :  { %2802 = vadd.xlane.f32.xlu1 %v2801_v42  ;;  %v2798_v43 = vsel %vm2714_vm5, %v2796_v41, 0.0  ;;  %v2939_v42 = vld [vmem:[%s4364_s4 + $0x78] sm:$0xff] }
 0x66f   :  { %2799 = vadd.xlane.f32.xlu0 %v2798_v43 }
 0x67f   :  { %2832 = vrot.lane.b32.xlu1 %v4230_v44, %s3623_s27 }
 0x6fb   :  { %v2803_v45 = vpop.xlane.xlu1 %2802 }
 0x6fc   :  { %v2806_v46 = vmul.f32 0.015625, %v2803_v45  ;;  %v2800_v47 = vpop.xlane.xlu0 %2799 }
 0x6fd   :  { %v2805_v48 = vmul.f32 0.015625, %v2800_v47 }
 0x6fe   :  { %v4234_v49 = vsub.f32 %v2797_v54, %v2806_v46 }
 0x6ff   :  { %v4236_v7 = vsub.f32 %v2796_v41, %v2805_v48  ;;  %v2833_v35 = vpop.permute.xlu1 %2832  ;;  %v2938_v41 = vld [vmem:[%s4364_s4 + $0x70] sm:$0xff]  ;;  %s3630_s4 = smov [#allocation2]  }
 0x700   :  { %v2810_v53 = vmul.f32 %v4234_v49, %v4234_v49  ;;  %v3539_v43 = vpack.c.bf16 %v2939_v42, %v2938_v41 }
 0x701   :  { %v2809_v50 = vmul.f32 %v4236_v7, %v4236_v7 }
 0x702   :  { %v2814_v52 = vsel %vm2714_vm5, %v2810_v53, 0.0  ;;  %3540 = vmatprep.subr.bf16.mxu1 %v3539_v43 }
 0x703   :  { %v2811_v51 = vsel %vm2714_vm5, %v2809_v50, 0.0  ;;  %3542 = vmatpush3.bf16.msra.mxu1 %v3539_v43  ;;  %v3221_v50 = vld [vmem:[%s4365_s5 + $0x6] ss:$0 sm:$0xff] }
 0x704   :  { %2812 = vadd.xlane.f32.xlu0 %v2811_v51 }
 0x708   :  { %2815 = vadd.xlane.f32.xlu0 %v2814_v52 }
 0x791   :  { %v2813_v9 = vpop.xlane.xlu0 %2812 }
 0x792   :  { %v2817_v28 = vmul.f32 0.015625, %v2813_v9 }
 0x794   :  { %v2819_v29 = vadd.f32 1e-05, %v2817_v28 }
 0x795   :  { %v2816_v31 = vpop.xlane.xlu0 %2815 }
 0x796   :  { %3589 = vrsqrt.f32 %v2819_v29  ;;  %v2818_v32 = vmul.f32 0.015625, %v2816_v31 }
 0x798   :  { %v2820_v30 = vadd.f32 1e-05, %v2818_v32 }
 0x79a   :  { %3591 = vrsqrt.f32 %v2820_v30 }
 0x7a0   :  { %v3590_v33 = vpop.eup %3589 }
 0x7a1   :  { %v2823_v34 = vmul.f32 %v3590_v33, %v4236_v7 }
 0x7a3   :  { %v2829_v36 = vmul.f32 %v4230_v44, %v2823_v34 }
 0x7a4   :  { %v3592_v39 = vpop.eup %3591 }
 0x7a5   :  { %v2824_v37 = vmul.f32 %v3592_v39, %v4234_v49  ;;  %v2835_v38 = vadd.f32 %v2833_v35, %v2829_v36 }
 0x7a7   :  { %v2830_v54 = vmul.f32 %v4230_v44, %v2824_v37  ;;  %3409 = vmatprep.mubr.msk.f32.mxu0 %vm2714_vm5, %v2835_v38  ;;  %v3218_v44 = vld [vmem:[%s4365_s5 + $0x1] ss:$0 sm:$0xff]  ;;  %s3157_s5 = sshll.u32 %s3630_s4, 4  ;;  %s3158_s5 = int_to_ptr.vmem [resolvable:$true] %s3157_s5 }
 0x7a8   :  { %s3595_s0 = scalar_lea.vmem %s3158_s5, 256  ;;  %p3600_p1 = scmp.lt.s32.totalorder %s3158_s5, %s3158_s5 }
 0x7a9   :  { %v2836_v40 = vadd.f32 %v2833_v35, %v2830_v54  ;;  %p3596_p0 = scmp.ne.s32.totalorder %s3158_s5, %s3595_s0  ;;  %p3601_p2 = scmp.lt.s32.totalorder %s3595_s0, %s3595_s0 }
 0x7ab   :  { %3410 = vmatmul.mubr.msk.f32.vlgmr.msra.gmra.mrb[14].mxu0 %vm2714_vm5, %v2836_v40  ;;  %p3602_p3 = por %p3601_p2, %p3600_p1 }
 0x7ad   :  { %p3603_p4 = pnand %p3602_p3, %p3596_p0 }
 0x87e   :  { %v3411_v45 = vpop.f32.mrb[14].mxu0 }
 0x87f   :  { %v2919_v46 = vadd.f32 %v3411_v45, %v3218_v44  ;;  %v2913_v47 = vpop.f32.mrb[15].mxu0 }
 0x880   :  { %v2914_v48 = vadd.f32 %v3218_v44, %v2913_v47 }
 0x881   :  { %v2923_v7 = vmax.f32 %v2919_v46, 0.0 }
 0x882   :  { %v2922_v49 = vmax.f32 %v2914_v48, 0.0 }
 0x884   :  { %3444 = vmatprep.mubr.f32.mxu1 %v2922_v49 }
 0x885   :  { %3445 = vmatmul.mubr.f32.vlgmr.msra.gmra.mrb[24].mxu1 %v2923_v7 }
 0x958   :  { %v3446_v51 = vpop.f32.mrb[24].mxu1 }
 0x959   :  { %v3016_v53 = vadd.f32 %v3446_v51, %v3221_v50  ;;  %v3010_v52 = vpop.f32.mrb[25].mxu1 }
 0x95a   :  { %v3011_v58 = vadd.f32 %v3221_v50, %v3010_v52 }
 0x95b   :  { %v3020_v56 = vadd.f32 %v3016_v53, %v2836_v40 }
 0x95c   :  { %v3019_v55 = vadd.f32 %v3011_v58, %v2835_v38 }
 0x95d   :  { %v3040_v24 = vcombine.high %v3020_v56, %v3020_v56  ;;  %v3047_v61 = vrot.slane %v3020_v56, %v3804_v11 }
 0x95e   :  { %v3023_v57 = vcombine.high %v3019_v55, %v3019_v55  ;;  %v3030_v59 = vrot.slane %v3019_v55, %v3804_v11 }
 0x95f   :  { %v3054_v13 = vrot.slane %v3040_v24, %v3804_v11  ;;  %v3055_v17 = vcombine.high %v3047_v61, %v3047_v61 }
 0x960   :  { %v3037_v25 = vrot.slane %v3023_v57, %v3804_v11  ;;  %v3038_v26 = vcombine.high %v3030_v59, %v3030_v59 }
 0x961   :  { %v3056_v62 = vcombine.high %v3054_v13, %v3054_v13  ;;  %v3083_v14 = vcombine.low %v3047_v61, %v3055_v17 }
 0x962   :  { %v3039_v60 = vcombine.high %v3037_v25, %v3037_v25  ;;  %v3065_v18 = vcombine.low %v3030_v59, %v3038_v26 }
 0x963   :  { %v3092_v10 = vcombine.low %v3054_v13, %v3056_v62 }
 0x964   :  { %3606 = shalt.err (!%p3603_p4)
}
 0x965   :  { %s3607_s24 = scalar_lea.hbm %s4367_s7, 256 }
 0x966   :  { %p3608_p5 = scmp.ne.s32.totalorder %s4367_s7, %s3607_s24  ;;  %p3611_p6 = scmp.lt.u32.totalorder %s3607_s24, %s4367_s7 }
 0x968   :  { %p3613_p7 = pnand %p3611_p6, %p3608_p5 }
 0x96a   :  { %3616 = shalt.err (!%p3613_p7)
}
 0x96b   :  { %s3631_s30 = smov 128   ;;  %s3632_s8 = smov 8   ;;  %v3074_v19 = vcombine.low %v3037_v25, %v3039_v60  ;;  %v3090_v15 = vrot.slane %v3083_v14, %v3808_v20  ;;  %v3099_v21 = vrot.slane %v3092_v10, %v3808_v20  ;;  %v3072_v22 = vrot.slane %v3065_v18, %v3808_v20 }
 0x96c   :  { %3163 = dma.vmem_to_hbm [thread:$0]  %s3158_s5, 256, %s4367_s7, [#allocation3], %s3631_s30, %s3631_s30, %s3632_s8   ;;  %vm3148_vm6 = vcmask 1048064  }
 0x96d   :  { %v3081_v63 = vrot.slane %v3074_v19, %v3808_v20  ;;  %v3223_v12 = vcombine.high %v3090_v15, %v3099_v21  ;;  %v3106_v27 = vcombine.low %v3090_v15, %v3099_v21 }
 0x96f   :  { %v3222_v16 = vcombine.high %v3072_v22, %v3081_v63  ;;  %v3105_v23 = vcombine.low %v3072_v22, %v3081_v63  ;;  %v3143_v1 = vrot.slane %v3223_v12, %v3804_v11  ;;  %v3120_v2 = vrot.slane %v3106_v27, %v3804_v11 }
 0x971   :  { %v3136_v3 = vrot.slane %v3222_v16, %v3804_v11  ;;  %v3113_v0 = vrot.slane %v3105_v23, %v3804_v11 }
 0x973   :  { %v3144_v4 = vcombine.low %v3136_v3, %v3143_v1  ;;  %v3121_v5 = vcombine.low %v3113_v0, %v3120_v2 }
 0x975   :  { %3145 = vrot.lane.b32.xlu0 %v3144_v4, %s3623_s27  ;;  %3123 = vst.msk [vmem:[%s4366_s6] sm:$0xff] %vm2714_vm5, %v3121_v5 }
 0x9e7   :  { %v3146_v20 = vpop.permute.xlu0 %3145 }
 0x9e8   :  { %3149 = vst.msk [vmem:[%s4366_s6] sm:$0xff] %vm3148_vm6, %v3146_v20 }
 0x9e9   :  { %3617 = dma.done.wait [#allocation3], 256  }
 0x9ea   :  { %3618 = vsyncadd [#allocation3], 4294967040 }
 0x9eb   :  { %3169 = vsyncpa [#allocation3], 1 }

</bundles_post_ra>
